<compile_context>
chip_gen: v7x
topology: tpu7x:2x2x1
jax: 0.10.0
libtpu: 0.0.40
codegen_flags: <defaults>
</compile_context>

<pallas_src>
import jax
import jax.numpy as jnp
from jax.experimental import pallas as pl
from jax.experimental.pallas import tpu as pltpu

IN_FEATURES = 28 * 28       # 784
HIDDEN = 200
OUT = 10

HIDDEN_PAD = 256            # 200 padded to a full lane / MXU tile
OUT_PAD = 128               # 10 padded to one full lane group (unmasked stores)


def _round_up(x, m):
    return ((x + m - 1) // m) * m


def mlp_kernel(x_ref, w1_ref, b1_ref, w2_ref, b2_ref, w3_ref, b3_ref, o_ref):
    # x arrives f32 (TB, 784); cast to bf16 in-kernel (MXU-native operand).
    x = x_ref[...].astype(jnp.bfloat16)
    # Layer 1: (TB, 784)bf16 @ (784, 256)bf16 -> f32 acc, bias + ReLU in f32.
    h1 = jnp.dot(x, w1_ref[...], preferred_element_type=jnp.float32)
    h1 = jnp.maximum(h1 + b1_ref[...], 0.0).astype(jnp.bfloat16)
    # Layer 2: (TB, 256)bf16 @ (256, 256)bf16 -> f32 acc.
    h2 = jnp.dot(h1, w2_ref[...], preferred_element_type=jnp.float32)
    h2 = jnp.maximum(h2 + b2_ref[...], 0.0).astype(jnp.bfloat16)
    # Output layer: (TB, 256)bf16 @ (256, 128)bf16 -> f32 acc (cols 10..127 are 0).
    out = jnp.dot(h2, w3_ref[...], preferred_element_type=jnp.float32)
    o_ref[...] = (out + b3_ref[...]).astype(o_ref.dtype)


def prepare_params(params):
    """Pad raw (in,out)-layout f32 params to MXU/lane-friendly shapes.

    Weights -> bf16, zero-padded; biases -> f32, zero-padded.  Zero padding is
    exact: padded hidden lanes stay 0 through ReLU and contribute nothing, and
    padded output columns are exactly 0 (sliced off in the wrapper).
    """
    w1, b1, w2, b2, w3, b3 = params
    w1p = jnp.zeros((IN_FEATURES, HIDDEN_PAD), jnp.bfloat16).at[:, :HIDDEN].set(
        w1.astype(jnp.bfloat16))
    b1p = jnp.zeros((1, HIDDEN_PAD), jnp.float32).at[:, :HIDDEN].set(b1)
    w2p = jnp.zeros((HIDDEN_PAD, HIDDEN_PAD), jnp.bfloat16).at[:HIDDEN, :HIDDEN].set(
        w2.astype(jnp.bfloat16))
    b2p = jnp.zeros((1, HIDDEN_PAD), jnp.float32).at[:, :HIDDEN].set(b2)
    w3p = jnp.zeros((HIDDEN_PAD, OUT_PAD), jnp.bfloat16).at[:HIDDEN, :OUT].set(
        w3.astype(jnp.bfloat16))
    b3p = jnp.zeros((1, OUT_PAD), jnp.float32).at[:, :OUT].set(b3)
    return (w1p, b1p, w2p, b2p, w3p, b3p)


def _choose_batch_tiling(B, max_tile=2048):
    """Pick (TB, Bp): pad B to at most one extra 128-row tile, take the largest
    tile size that divides that padded batch, and guarantee >=2 grid steps when
    possible so the 'parallel' batch axis can use both TensorCores on v7x."""
    bp128 = _round_up(B, 128)
    tb = 128
    for t in (2048, 1024, 512, 256, 128):
        if t <= max_tile and bp128 % t == 0:
            tb = t
            break
    if bp128 // tb == 1 and tb >= 256:   # single grid step -> split for v7x megacore
        tb //= 2
    return tb, bp128


def mnist_2nn_forward(x, padded_params, *, max_tile=2048):
    """x: (B, 1, 28, 28) or (B, 784) float32. Returns (B, 10) float32."""
    B = x.shape[0]
    x2d = x.reshape(B, -1)                       # (B, 784) f32, no copy pass
    assert x2d.shape[1] == IN_FEATURES
    TB, Bp = _choose_batch_tiling(B, max_tile)
    if Bp != B:                                  # batch-only zero pad
        x2d = jnp.pad(x2d, ((0, Bp - B), (0, 0)))

    w1, b1, w2, b2, w3, b3 = padded_params

    # Weights/biases: constant index_map -> fetched once, VMEM resident.
    resident = lambda a: pl.BlockSpec(a.shape, lambda i: (0,) * a.ndim)

    out = pl.pallas_call(
        mlp_kernel,
        out_shape=jax.ShapeDtypeStruct((Bp, OUT_PAD), jnp.float32),
        grid=(Bp // TB,),
        in_specs=[
            pl.BlockSpec((TB, IN_FEATURES), lambda i: (i, 0)),  # x streamed per tile
            resident(w1), resident(b1),
            resident(w2), resident(b2),
            resident(w3), resident(b3),
        ],
        out_specs=pl.BlockSpec((TB, OUT_PAD), lambda i: (i, 0)),
        compiler_params=pltpu.CompilerParams(
            dimension_semantics=("parallel",),
            vmem_limit_bytes=48 * 1024 * 1024,   # TB=2048 budget ~25 MiB; < v7x 64 MiB
        ),
    )(x2d, w1, b1, w2, b2, w3, b3)
    return out[:B, :OUT]


def init_params(key):
    """Deterministic init mimicking nn.Linear (uniform in +/- 1/sqrt(fan_in)).
    Weights stored as (in_features, out_features); biases as (1, out); f32."""
    dims = [(IN_FEATURES, HIDDEN), (HIDDEN, HIDDEN), (HIDDEN, OUT)]
    params = []
    for fan_in, fan_out in dims:
        key, kw, kb = jax.random.split(key, 3)
        bound = 1.0 / jnp.sqrt(fan_in)
        w = jax.random.uniform(kw, (fan_in, fan_out), jnp.float32, -bound, bound)
        b = jax.random.uniform(kb, (1, fan_out), jnp.float32, -bound, bound)
        params.extend([w, b])
    return tuple(params)


if __name__ == "__main__":
    key = jax.random.PRNGKey(0)
    kp, kx = jax.random.split(key)
    params = init_params(kp)
    padded_params = prepare_params(params)

    B = 8
    x = jax.random.normal(kx, (B, 1, 28, 28), jnp.float32)  # MNIST-like NCHW

    out = mnist_2nn_forward(x, padded_params)
    out = jax.block_until_ready(out)

    # Reference check in plain f32 JAX (kernel uses bf16 operands -> loose tol).
    w1, b1, w2, b2, w3, b3 = params
    xf = x.reshape(B, -1)
    ref = jnp.maximum(xf @ w1 + b1, 0.0)
    ref = jnp.maximum(ref @ w2 + b2, 0.0)
    ref = ref @ w3 + b3
    assert out.shape == (B, OUT)
    assert jnp.allclose(out, ref, atol=5e-2, rtol=5e-2), (
        float(jnp.max(jnp.abs(out - ref))))

    print("KERNEL_OK")
</pallas_src>

<mosaic_0001>
module attributes {stable_mosaic.version = 11 : i64} {
  func.func @mlp_kernel(%arg0: i32, %arg1: memref<128x784xf32, #tpu.memory_space<vmem>>, %arg2: memref<784x256xbf16, #tpu.memory_space<vmem>>, %arg3: memref<1x256xf32, #tpu.memory_space<vmem>>, %arg4: memref<256x256xbf16, #tpu.memory_space<vmem>>, %arg5: memref<1x256xf32, #tpu.memory_space<vmem>>, %arg6: memref<256x128xbf16, #tpu.memory_space<vmem>>, %arg7: memref<1x128xf32, #tpu.memory_space<vmem>>, %arg8: memref<128x128xf32, #tpu.memory_space<vmem>>) attributes {dimension_semantics = [#tpu.dimension_semantics<parallel>], iteration_bounds = array<i64: 1>, scalar_prefetch = 0 : i64, scratch_operands = 0 : i64, tpu.core_type = #tpu.core_type<tc>, window_params = [{transform_indices = @transform_0, window_bounds = array<i64: 128, 784>}, {pipeline_mode = #tpu.pipeline_mode<synchronous>, transform_indices = @transform_1, window_bounds = array<i64: 784, 256>}, {pipeline_mode = #tpu.pipeline_mode<synchronous>, transform_indices = @transform_2, window_bounds = array<i64: 1, 256>}, {pipeline_mode = #tpu.pipeline_mode<synchronous>, transform_indices = @transform_3, window_bounds = array<i64: 256, 256>}, {pipeline_mode = #tpu.pipeline_mode<synchronous>, transform_indices = @transform_4, window_bounds = array<i64: 1, 256>}, {pipeline_mode = #tpu.pipeline_mode<synchronous>, transform_indices = @transform_5, window_bounds = array<i64: 256, 128>}, {pipeline_mode = #tpu.pipeline_mode<synchronous>, transform_indices = @transform_6, window_bounds = array<i64: 1, 128>}, {transform_indices = @transform_7, window_bounds = array<i64: 128, 128>}]} {
    %c0 = arith.constant 0 : index
    %c0_0 = arith.constant 0 : index
    %0 = vector.load %arg1[%c0, %c0_0] : memref<128x784xf32, #tpu.memory_space<vmem>>, vector<128x784xf32>
    %1 = arith.truncf %0 : vector<128x784xf32> to vector<128x784xbf16>
    %c0_1 = arith.constant 0 : index
    %c0_2 = arith.constant 0 : index
    %2 = vector.load %arg2[%c0_1, %c0_2] : memref<784x256xbf16, #tpu.memory_space<vmem>>, vector<784x256xbf16>
    %cst = arith.constant dense<0.000000e+00> : vector<128x256xf32>
    %3 = tpu.matmul %1, %2, %cst {dimension_numbers = #tpu.dot_dimension_numbers<[1], [0], [0], [1], [0, 0, 1, 1], [], []>} : vector<128x784xbf16>, vector<784x256xbf16>, vector<128x256xf32> -> vector<128x256xf32>
    %c0_3 = arith.constant 0 : index
    %c0_4 = arith.constant 0 : index
    %4 = vector.load %arg3[%c0_3, %c0_4] : memref<1x256xf32, #tpu.memory_space<vmem>>, vector<1x256xf32>
    %5 = vector.broadcast %4 : vector<1x256xf32> to vector<128x256xf32>
    %6 = arith.addf %3, %5 : vector<128x256xf32>
    %cst_5 = arith.constant 0.000000e+00 : f32
    %7 = vector.broadcast %cst_5 : f32 to vector<128x256xf32>
    %8 = arith.maximumf %6, %7 : vector<128x256xf32>
    %9 = arith.truncf %8 : vector<128x256xf32> to vector<128x256xbf16>
    %c0_6 = arith.constant 0 : index
    %c0_7 = arith.constant 0 : index
    %10 = vector.load %arg4[%c0_6, %c0_7] : memref<256x256xbf16, #tpu.memory_space<vmem>>, vector<256x256xbf16>
    %cst_8 = arith.constant dense<0.000000e+00> : vector<128x256xf32>
    %11 = tpu.matmul %9, %10, %cst_8 {dimension_numbers = #tpu.dot_dimension_numbers<[1], [0], [0], [1], [0, 0, 1, 1], [], []>} : vector<128x256xbf16>, vector<256x256xbf16>, vector<128x256xf32> -> vector<128x256xf32>
    %c0_9 = arith.constant 0 : index
    %c0_10 = arith.constant 0 : index
    %12 = vector.load %arg5[%c0_9, %c0_10] : memref<1x256xf32, #tpu.memory_space<vmem>>, vector<1x256xf32>
    %13 = vector.broadcast %12 : vector<1x256xf32> to vector<128x256xf32>
    %14 = arith.addf %11, %13 : vector<128x256xf32>
    %cst_11 = arith.constant 0.000000e+00 : f32
    %15 = vector.broadcast %cst_11 : f32 to vector<128x256xf32>
    %16 = arith.maximumf %14, %15 : vector<128x256xf32>
    %17 = arith.truncf %16 : vector<128x256xf32> to vector<128x256xbf16>
    %c0_12 = arith.constant 0 : index
    %c0_13 = arith.constant 0 : index
    %18 = vector.load %arg6[%c0_12, %c0_13] : memref<256x128xbf16, #tpu.memory_space<vmem>>, vector<256x128xbf16>
    %cst_14 = arith.constant dense<0.000000e+00> : vector<128x128xf32>
    %19 = tpu.matmul %17, %18, %cst_14 {dimension_numbers = #tpu.dot_dimension_numbers<[1], [0], [0], [1], [0, 0, 1, 1], [], []>} : vector<128x256xbf16>, vector<256x128xbf16>, vector<128x128xf32> -> vector<128x128xf32>
    %c0_15 = arith.constant 0 : index
    %c0_16 = arith.constant 0 : index
    %20 = vector.load %arg7[%c0_15, %c0_16] : memref<1x128xf32, #tpu.memory_space<vmem>>, vector<1x128xf32>
    %21 = vector.broadcast %20 : vector<1x128xf32> to vector<128x128xf32>
    %22 = arith.addf %19, %21 : vector<128x128xf32>
    %c0_17 = arith.constant 0 : index
    %c0_18 = arith.constant 0 : index
    %23 = vector.load %arg8[%c0_17, %c0_18] : memref<128x128xf32, #tpu.memory_space<vmem>>, vector<128x128xf32>
    tpu.vector_store %arg8[%c0_17, %c0_18], %22 {strides = array<i32>} : memref<128x128xf32, #tpu.memory_space<vmem>>, vector<128x128xf32>,
    return
  }
  func.func @transform_0(%arg0: i32) -> (i32, i32) {
    %c0_i32 = arith.constant 0 : i32
    %c0_i32_0 = arith.constant 0 : i32
    return %arg0, %c0_i32 : i32, i32
  }
  func.func @transform_1(%arg0: i32) -> (i32, i32) {
    %c0_i32 = arith.constant 0 : i32
    %c0_i32_0 = arith.constant 0 : i32
    %c0_i32_1 = arith.constant 0 : i32
    return %c0_i32, %c0_i32_0 : i32, i32
  }
  func.func @transform_2(%arg0: i32) -> (i32, i32) {
    %c0_i32 = arith.constant 0 : i32
    %c0_i32_0 = arith.constant 0 : i32
    %c0_i32_1 = arith.constant 0 : i32
    return %c0_i32, %c0_i32_0 : i32, i32
  }
  func.func @transform_3(%arg0: i32) -> (i32, i32) {
    %c0_i32 = arith.constant 0 : i32
    %c0_i32_0 = arith.constant 0 : i32
    %c0_i32_1 = arith.constant 0 : i32
    return %c0_i32, %c0_i32_0 : i32, i32
  }
  func.func @transform_4(%arg0: i32) -> (i32, i32) {
    %c0_i32 = arith.constant 0 : i32
    %c0_i32_0 = arith.constant 0 : i32
    %c0_i32_1 = arith.constant 0 : i32
    return %c0_i32, %c0_i32_0 : i32, i32
  }
  func.func @transform_5(%arg0: i32) -> (i32, i32) {
    %c0_i32 = arith.constant 0 : i32
    %c0_i32_0 = arith.constant 0 : i32
    %c0_i32_1 = arith.constant 0 : i32
    return %c0_i32, %c0_i32_0 : i32, i32
  }
  func.func @transform_6(%arg0: i32) -> (i32, i32) {
    %c0_i32 = arith.constant 0 : i32
    %c0_i32_0 = arith.constant 0 : i32
    %c0_i32_1 = arith.constant 0 : i32
    return %c0_i32, %c0_i32_0 : i32, i32
  }
  func.func @transform_7(%arg0: i32) -> (i32, i32) {
    %c0_i32 = arith.constant 0 : i32
    %c0_i32_0 = arith.constant 0 : i32
    return %arg0, %c0_i32 : i32, i32
  }
}

</mosaic_0001>

<bundles_post_ra>
// kernel: tpu_custom_call.1
= control target key start
LH: loop header
LB: loop body
LE: loop exit
PB: predicated region body
PF: predicated region fallthrough
CT: control target
= control target key end

     0   :  { %s3557_s0 = inlined_call_operand.vmem [shape: f32[128,784], index: 0, kind: input, shape index: {}]   ;;  %s3558_s1 = inlined_call_operand.vmem [shape: bf16[784,256], index: 1, kind: input, shape index: {}]   ;;  %s3559_s2 = inlined_call_operand.vmem [shape: f32[1,256], index: 2, kind: input, shape index: {}]   ;;  %s3560_s3 = inlined_call_operand.vmem [shape: bf16[256,256], index: 3, kind: input, shape index: {}]   ;;  %s3561_s4 = inlined_call_operand.vmem [shape: f32[1,256], index: 4, kind: input, shape index: {}]   ;;  %s3562_s5 = inlined_call_operand.vmem [shape: bf16[256,128], index: 5, kind: input, shape index: {}]   ;;  %s3563_s6 = inlined_call_operand.vmem [shape: f32[1,128], index: 6, kind: input, shape index: {}]   ;;  %s3564_s7 = inlined_call_operand.hbm [shape: f32[128,128], index: 7, kind: output, shape index: {}]  }
   0x1   :  { %v2301_v0 = vld [vmem:[%s3558_s1 + $0x104] ss:$8 sps:$4 sm:$0xff]   ;;  %v2303_v1 = vld [vmem:[%s3558_s1 + $0x100] ss:$8 sps:$4 sm:$0xff]   ;;  %v2304_v2 = vld [vmem:[%s3558_s1 + $0x114] ss:$8 sps:$4 sm:$0xff]  }
   0x2   :  { %934 = vmatprep.subr.bf16.mxu0 %v2301_v0  ;;  %v2306_v3 = vld [vmem:[%s3558_s1 + $0x110] ss:$8 sps:$4 sm:$0xff]   ;;  %v2307_v4 = vld [vmem:[%s3558_s1 + $0x124] ss:$8 sps:$4 sm:$0xff]   ;;  %v2309_v5 = vld [vmem:[%s3558_s1 + $0x120] ss:$8 sps:$4 sm:$0xff]  }
   0x3   :  { %935 = vmatpush1.bf16.msra.mxu0 %v2303_v1  ;;  %v2310_v6 = vld [vmem:[%s3558_s1 + $0x134] ss:$8 sps:$4 sm:$0xff]   ;;  %v2312_v7 = vld [vmem:[%s3558_s1 + $0x130] ss:$8 sps:$4 sm:$0xff]   ;;  %v2313_v8 = vld [vmem:[%s3558_s1 + $0x144] ss:$8 sps:$4 sm:$0xff]  }
   0x4   :  { %936 = vmatprep.subr.bf16.mxu0 %v2304_v2  ;;  %v2315_v9 = vld [vmem:[%s3558_s1 + $0x140] ss:$8 sps:$4 sm:$0xff]   ;;  %v2316_v10 = vld [vmem:[%s3558_s1 + $0x154] ss:$8 sps:$4 sm:$0xff]   ;;  %v2318_v11 = vld [vmem:[%s3558_s1 + $0x150] ss:$8 sps:$4 sm:$0xff]  }
   0x5   :  { %v2319_v12 = vld [vmem:[%s3558_s1 + $0x164] ss:$8 sps:$4 sm:$0xff]   ;;  %v31_v13 = vld [vmem:[%s3557_s0 + $0x18] sm:$0xff]  ;;  %v38_v14 = vld [vmem:[%s3557_s0 + $0x50] sm:$0xff] }
   0x6   :  { %v143_v15 = vpack.c.bf16 %v38_v14, %v31_v13  ;;  %v2321_v16 = vld [vmem:[%s3558_s1 + $0x160] ss:$8 sps:$4 sm:$0xff]   ;;  %v2322_v17 = vld [vmem:[%s3558_s1 + $0x174] ss:$8 sps:$4 sm:$0xff]   ;;  %v2324_v18 = vld [vmem:[%s3558_s1 + $0x170] ss:$8 sps:$4 sm:$0xff]  }
   0x7   :  { %937 = vmatpush1.bf16.msra.mxu0 %v2306_v3  ;;  %v2325_v19 = vld [vmem:[%s3558_s1 + $0x184] ss:$8 sps:$4 sm:$0xff]   ;;  %v2327_v20 = vld [vmem:[%s3558_s1 + $0x180] ss:$8 sps:$4 sm:$0xff]   ;;  %v2328_v21 = vld [vmem:[%s3558_s1 + $0x194] ss:$8 sps:$4 sm:$0xff]  }
   0x8   :  { %938 = vmatprep.subr.bf16.mxu0 %v2307_v4  ;;  %966 = vmatprep.mubr.bf16.mxu0 %v143_v15  ;;  %v2330_v22 = vld [vmem:[%s3558_s1 + $0x190] ss:$8 sps:$4 sm:$0xff]   ;;  %v2331_v23 = vld [vmem:[%s3558_s1 + $0x1a4] ss:$8 sps:$4 sm:$0xff]   ;;  %v2333_v24 = vld [vmem:[%s3558_s1 + $0x1a0] ss:$8 sps:$4 sm:$0xff]  }
   0x9   :  { %v2334_v25 = vld [vmem:[%s3558_s1 + $0x1b4] ss:$8 sps:$4 sm:$0xff]   ;;  %v2336_v26 = vld [vmem:[%s3558_s1 + $0x1b0] ss:$8 sps:$4 sm:$0xff]   ;;  %v2337_v27 = vld [vmem:[%s3558_s1 + $0x1c4] ss:$8 sps:$4 sm:$0xff]  }
   0xa   :  { %v2339_v28 = vld [vmem:[%s3558_s1 + $0x1c0] ss:$8 sps:$4 sm:$0xff]   ;;  %v2340_v29 = vld [vmem:[%s3558_s1 + $0x1d4] ss:$8 sps:$4 sm:$0xff]   ;;  %v2342_v30 = vld [vmem:[%s3558_s1 + $0x1d0] ss:$8 sps:$4 sm:$0xff]  }
   0xb   :  { %939 = vmatpush1.bf16.msra.mxu0 %v2309_v5  ;;  %v2343_v31 = vld [vmem:[%s3558_s1 + $0x1e4] ss:$8 sps:$4 sm:$0xff]   ;;  %v2399_v33 = vld [vmem:[%s3558_s1] ss:$8 sps:$4 sm:$0xff]   ;;  %v2346_v35 = vld [vmem:[%s3558_s1 + $0x1f4] ss:$8 sps:$4 sm:$0xff]  }
   0xc   :  { %940 = vmatprep.subr.bf16.mxu0 %v2310_v6  ;;  %v2394_v32 = vld [vmem:[%s3558_s1 + $0x4] ss:$8 sps:$4 sm:$0xff]   ;;  %v2345_v34 = vld [vmem:[%s3558_s1 + $0x1e0] ss:$8 sps:$4 sm:$0xff]   ;;  %v2400_v36 = vld [vmem:[%s3558_s1 + $0x14] ss:$8 sps:$4 sm:$0xff]  }
   0xd   :  { %821 = vmatprep.subr.bf16.mxu1 %v2394_v32  ;;  %v2348_v37 = vld [vmem:[%s3558_s1 + $0x1f0] ss:$8 sps:$4 sm:$0xff]   ;;  %v37_v39 = vld [vmem:[%s3557_s0 + $0x48] sm:$0xff]  ;;  %v52_v44 = vld [vmem:[%s3557_s0 + $0xc0] sm:$0xff] }
   0xe   :  { %822 = vmatpush1.bf16.msra.mxu1 %v2399_v33  ;;  %v30_v38 = vld [vmem:[%s3557_s0 + $0x10] sm:$0xff]  ;;  %v2351_v40 = vld [vmem:[%s3558_s1 + $0x204] ss:$8 sps:$4 sm:$0xff]   ;;  %v2408_v45 = vld [vmem:[%s3558_s1 + $0x20] ss:$8 sps:$4 sm:$0xff]  }
   0xf   :  { %941 = vmatpush1.bf16.msra.mxu0 %v2312_v7  ;;  %823 = vmatprep.subr.bf16.mxu1 %v2400_v36  ;;  %v2405_v41 = vld [vmem:[%s3558_s1 + $0x10] ss:$8 sps:$4 sm:$0xff]   ;;  %v45_v42 = vld [vmem:[%s3557_s0 + $0x88] sm:$0xff]  ;;  %v2409_v46 = vld [vmem:[%s3558_s1 + $0x34] ss:$8 sps:$4 sm:$0xff]   ;;  %v142_v47 = vpack.c.bf16 %v37_v39, %v30_v38 }
  0x10   :  { %942 = vmatprep.subr.bf16.mxu0 %v2313_v8  ;;  %v2406_v43 = vld [vmem:[%s3558_s1 + $0x24] ss:$8 sps:$4 sm:$0xff]   ;;  %v2349_v48 = vld [vmem:[%s3558_s1 + $0x200] ss:$8 sps:$4 sm:$0xff]   ;;  %v150_v49 = vpack.c.bf16 %v52_v44, %v45_v42  ;;  %v2354_v50 = vld [vmem:[%s3558_s1 + $0x214] ss:$8 sps:$4 sm:$0xff]  }
  0x11   :  { %v2411_v51 = vld [vmem:[%s3558_s1 + $0x30] ss:$8 sps:$4 sm:$0xff]   ;;  %v2412_v53 = vld [vmem:[%s3558_s1 + $0x44] ss:$8 sps:$4 sm:$0xff]   ;;  %v2414_v59 = vld [vmem:[%s3558_s1 + $0x40] ss:$8 sps:$4 sm:$0xff]  }
  0x12   :  { %824 = vmatpush1.bf16.msra.mxu1 %v2405_v41  ;;  %v2352_v52 = vld [vmem:[%s3558_s1 + $0x210] ss:$8 sps:$4 sm:$0xff]   ;;  %v44_v54 = vld [vmem:[%s3557_s0 + $0x80] sm:$0xff]  ;;  %v2415_v60 = vld [vmem:[%s3558_s1 + $0x54] ss:$8 sps:$4 sm:$0xff]  }
  0x13   :  { %943 = vmatpush1.bf16.msra.mxu0 %v2315_v9  ;;  %825 = vmatprep.subr.bf16.mxu1 %v2406_v43  ;;  %v51_v55 = vld [vmem:[%s3557_s0 + $0xb8] sm:$0xff]  ;;  %v2357_v56 = vld [vmem:[%s3558_s1 + $0x224] ss:$8 sps:$4 sm:$0xff]   ;;  %v66_v58 = vld [vmem:[%s3557_s0 + $0x130] sm:$0xff] }
  0x14   :  { %944 = vmatprep.subr.bf16.mxu0 %v2316_v10  ;;  %v59_v57 = vld [vmem:[%s3557_s0 + $0xf8] sm:$0xff]  ;;  %v149_v61 = vpack.c.bf16 %v51_v55, %v44_v54  ;;  %v2355_v62 = vld [vmem:[%s3558_s1 + $0x220] ss:$8 sps:$4 sm:$0xff]   ;;  %v2418_v3 = vld [vmem:[%s3558_s1 + $0x64] ss:$8 sps:$4 sm:$0xff]  }
  0x15   :  { %v157_v63 = vpack.c.bf16 %v66_v58, %v59_v57  ;;  %v2360_v0 = vld [vmem:[%s3558_s1 + $0x234] ss:$8 sps:$4 sm:$0xff]   ;;  %v2417_v1 = vld [vmem:[%s3558_s1 + $0x50] ss:$8 sps:$4 sm:$0xff]   ;;  %v65_v5 = vld [vmem:[%s3557_s0 + $0x128] sm:$0xff] }
  0x16   :  { %826 = vmatpush1.bf16.msra.mxu1 %v2408_v45  ;;  %v2358_v2 = vld [vmem:[%s3558_s1 + $0x230] ss:$8 sps:$4 sm:$0xff]   ;;  %v2363_v6 = vld [vmem:[%s3558_s1 + $0x244] ss:$8 sps:$4 sm:$0xff]   ;;  %v2420_v9 = vld [vmem:[%s3558_s1 + $0x60] ss:$8 sps:$4 sm:$0xff]  }
  0x17   :  { %945 = vmatpush1.bf16.msra.mxu0 %v2318_v11  ;;  %827 = vmatprep.subr.bf16.mxu1 %v2409_v46  ;;  %v58_v4 = vld [vmem:[%s3557_s0 + $0xf0] sm:$0xff]  ;;  %v73_v7 = vld [vmem:[%s3557_s0 + $0x168] sm:$0xff]  ;;  %v80_v8 = vld [vmem:[%s3557_s0 + $0x1a0] sm:$0xff] }
  0x18   :  { %946 = vmatprep.subr.bf16.mxu0 %v2319_v12  ;;  %v2421_v10 = vld [vmem:[%s3558_s1 + $0x74] ss:$8 sps:$4 sm:$0xff]   ;;  %v156_v11 = vpack.c.bf16 %v65_v5, %v58_v4  ;;  %v2361_v12 = vld [vmem:[%s3558_s1 + $0x240] ss:$8 sps:$4 sm:$0xff]   ;;  %v164_v13 = vpack.c.bf16 %v80_v8, %v73_v7  ;;  %v2423_v15 = vld [vmem:[%s3558_s1 + $0x70] ss:$8 sps:$4 sm:$0xff]  }
  0x19   :  { %v2366_v14 = vld [vmem:[%s3558_s1 + $0x254] ss:$8 sps:$4 sm:$0xff]   ;;  %v2430_v33 = vld [vmem:[%s3558_s1 + $0xa4] ss:$8 sps:$4 sm:$0xff]   ;;  %v2373_v43 = vld [vmem:[%s3558_s1 + $0x280] ss:$8 sps:$4 sm:$0xff]  }
  0x1a   :  { %828 = vmatpush1.bf16.msra.mxu1 %v2411_v51  ;;  %v93_v36 = vld [vmem:[%s3557_s0 + $0x208] sm:$0xff]  ;;  %v108_v39 = vld [vmem:[%s3557_s0 + $0x280] sm:$0xff]  ;;  %v2433_v41 = vld [vmem:[%s3558_s1 + $0xb4] ss:$8 sps:$4 sm:$0xff]  }
  0x1b   :  { %947 = vmatpush1.bf16.msra.mxu0 %v2321_v16  ;;  %829 = vmatprep.subr.bf16.mxu1 %v2412_v53  ;;  %v2364_v16 = vld [vmem:[%s3558_s1 + $0x250] ss:$8 sps:$4 sm:$0xff]   ;;  %v101_v38 = vld [vmem:[%s3557_s0 + $0x248] sm:$0xff]  ;;  %v2378_v45 = vld [vmem:[%s3558_s1 + $0x294] ss:$8 sps:$4 sm:$0xff]  }
  0x1c   :  { %948 = vmatprep.subr.bf16.mxu0 %v2322_v17  ;;  %v2424_v17 = vld [vmem:[%s3558_s1 + $0x84] ss:$8 sps:$4 sm:$0xff]   ;;  %v178_v44 = vpack.c.bf16 %v108_v39, %v101_v38  ;;  %v2435_v46 = vld [vmem:[%s3558_s1 + $0xb0] ss:$8 sps:$4 sm:$0xff]   ;;  %v2438_v54 = vld [vmem:[%s3558_s1 + $0xc0] ss:$8 sps:$4 sm:$0xff]  }
  0x1d   :  { %v2381_v51 = vld [vmem:[%s3558_s1 + $0x2a4] ss:$8 sps:$4 sm:$0xff]   ;;  %v122_v53 = vld [vmem:[%s3557_s0 + $0x2f0] sm:$0xff]  ;;  %v2444_v4 = vld [vmem:[%s3558_s1 + $0xe0] ss:$8 sps:$4 sm:$0xff]  }
  0x1e   :  { %830 = vmatpush1.bf16.msra.mxu1 %v2414_v59  ;;  %v2439_v55 = vld [vmem:[%s3558_s1 + $0xd4] ss:$8 sps:$4 sm:$0xff]   ;;  %v2441_v59 = vld [vmem:[%s3558_s1 + $0xd0] ss:$8 sps:$4 sm:$0xff]   ;;  %v2404_v38 = vld [vmem:[%s3558_s1 + $0x304] ss:$8 sps:$4 sm:$0xff]  }
  0x1f   :  { %949 = vmatpush1.bf16.msra.mxu0 %v2324_v18  ;;  %831 = vmatprep.subr.bf16.mxu1 %v2415_v60  ;;  %v72_v18 = vld [vmem:[%s3557_s0 + $0x160] sm:$0xff]  ;;  %v2384_v58 = vld [vmem:[%s3558_s1 + $0x2b4] ss:$8 sps:$4 sm:$0xff]  }
  0x20   :  { %950 = vmatprep.subr.bf16.mxu0 %v2325_v19  ;;  %v79_v19 = vld [vmem:[%s3557_s0 + $0x198] sm:$0xff] }
  0x21   :  { %v2445_v5 = vld [vmem:[%s3558_s1 + $0xf4] ss:$8 sps:$4 sm:$0xff]  }
  0x22   :  { %832 = vmatpush1.bf16.msra.mxu1 %v2417_v1  ;;  %v2387_v1 = vld [vmem:[%s3558_s1 + $0x2c4] ss:$8 sps:$4 sm:$0xff]   ;;  %v2390_v8 = vld [vmem:[%s3558_s1 + $0x2d4] ss:$8 sps:$4 sm:$0xff]  }
  0x23   :  { %951 = vmatpush1.bf16.msra.mxu0 %v2327_v20  ;;  %833 = vmatprep.subr.bf16.mxu1 %v2418_v3  ;;  %v2369_v20 = vld [vmem:[%s3558_s1 + $0x264] ss:$8 sps:$4 sm:$0xff]   ;;  %v47_v39 = vld [vmem:[%s3557_s0 + $0x98] sm:$0xff] }
  0x24   :  { %952 = vmatprep.subr.bf16.mxu0 %v2328_v21  ;;  %v87_v21 = vld [vmem:[%s3557_s0 + $0x1d8] sm:$0xff]  ;;  %v136_v3 = vld [vmem:[%s3557_s0 + $0x360] sm:$0xff] }
  0x26   :  { %834 = vmatpush1.bf16.msra.mxu1 %v2420_v9  ;;  %v2447_v9 = vld [vmem:[%s3558_s1 + $0xf0] ss:$8 sps:$4 sm:$0xff]  }
  0x27   :  { %953 = vmatpush1.bf16.msra.mxu0 %v2330_v22  ;;  %835 = vmatprep.subr.bf16.mxu1 %v2421_v10  ;;  %v94_v22 = vld [vmem:[%s3557_s0 + $0x210] sm:$0xff]  ;;  %v28_v10 = vld [vmem:[%s3557_s0] sm:$0xff] }
  0x28   :  { %954 = vmatprep.subr.bf16.mxu0 %v2331_v23  ;;  %v2426_v23 = vld [vmem:[%s3558_s1 + $0x80] ss:$8 sps:$4 sm:$0xff]  }
  0x2a   :  { %836 = vmatpush1.bf16.msra.mxu1 %v2423_v15  ;;  %v43_v15 = vld [vmem:[%s3557_s0 + $0x78] sm:$0xff] }
  0x2b   :  { %955 = vmatpush1.bf16.msra.mxu0 %v2333_v24  ;;  %837 = vmatprep.subr.bf16.mxu1 %v2424_v17  ;;  %v2427_v24 = vld [vmem:[%s3558_s1 + $0x94] ss:$8 sps:$4 sm:$0xff]  }
  0x2c   :  { %956 = vmatprep.subr.bf16.mxu0 %v2334_v25  ;;  %v163_v25 = vpack.c.bf16 %v79_v19, %v72_v18  ;;  %v135_v17 = vld [vmem:[%s3557_s0 + $0x358] sm:$0xff]  ;;  %v2393_v18 = vld [vmem:[%s3558_s1 + $0x2e4] ss:$8 sps:$4 sm:$0xff]  }
  0x2d   :  { %v33_v19 = vld [vmem:[%s3557_s0 + $0x28] sm:$0xff] }
  0x2e   :  { %838 = vmatpush1.bf16.msra.mxu1 %v2426_v23  ;;  %v2391_v23 = vld [vmem:[%s3558_s1 + $0x2e0] ss:$8 sps:$4 sm:$0xff]  }
  0x2f   :  { %957 = vmatpush1.bf16.msra.mxu0 %v2336_v26  ;;  %v29_v26 = vld [vmem:[%s3557_s0 + $0x8] sm:$0xff]  ;;  %839 = vmatprep.subr.bf16.mxu1 %v2427_v24 }
  0x30   :  { %958 = vmatprep.subr.bf16.mxu0 %v2337_v27  ;;  %v2367_v27 = vld [vmem:[%s3558_s1 + $0x260] ss:$8 sps:$4 sm:$0xff]  }
  0x33   :  { %959 = vmatpush1.bf16.msra.mxu0 %v2339_v28  ;;  %v171_v28 = vpack.c.bf16 %v94_v22, %v87_v21 }
  0x34   :  { %960 = vmatprep.subr.bf16.mxu0 %v2340_v29  ;;  %v36_v29 = vld [vmem:[%s3557_s0 + $0x40] sm:$0xff] }
  0x35   :  { %v141_v32 = vpack.c.bf16 %v36_v29, %v29_v26  ;;  %v42_v26 = vld [vmem:[%s3557_s0 + $0x70] sm:$0xff]  ;;  %v57_v29 = vld [vmem:[%s3557_s0 + $0xe8] sm:$0xff] }
  0x37   :  { %961 = vmatpush1.bf16.msra.mxu0 %v2342_v30  ;;  %v2372_v30 = vld [vmem:[%s3558_s1 + $0x274] ss:$8 sps:$4 sm:$0xff]   ;;  %853 = vmatprep.mubr.bf16.mxu1 %v141_v32  ;;  %v2448_v32 = vld [vmem:[%s3560_s3] ss:$8 sps:$4 sm:$0xff]  }
  0x38   :  { %962 = vmatprep.subr.bf16.mxu0 %v2343_v31  ;;  %v2429_v31 = vld [vmem:[%s3558_s1 + $0x90] ss:$8 sps:$4 sm:$0xff]  }
  0x39   :  { %840 = vmatpush1.bf16.msra.mxu1 %v2429_v31  ;;  %v2396_v31 = vld [vmem:[%s3558_s1 + $0x2f0] ss:$8 sps:$4 sm:$0xff]  }
  0x3a   :  { %841 = vmatprep.subr.bf16.mxu1 %v2430_v33  ;;  %v2450_v33 = vld [vmem:[%s3560_s3 + $0x4] ss:$8 sps:$4 sm:$0xff]  }
  0x3b   :  { %963 = vmatpush1.bf16.msra.mxu0 %v2345_v34  ;;  %v2370_v34 = vld [vmem:[%s3558_s1 + $0x270] ss:$8 sps:$4 sm:$0xff]  }
  0x3c   :  { %964 = vmatprep.subr.bf16.mxu0 %v2346_v35  ;;  %v86_v35 = vld [vmem:[%s3557_s0 + $0x1d0] sm:$0xff] }
  0x3d   :  { %v170_v42 = vpack.c.bf16 %v93_v36, %v86_v35  ;;  %v39_v35 = vld [vmem:[%s3557_s0 + $0x58] sm:$0xff] }
  0x3f   :  { %965 = vmatpush1.bf16.msra.mxu0 %v2348_v37  ;;  %v2375_v37 = vld [vmem:[%s3558_s1 + $0x284] ss:$8 sps:$4 sm:$0xff]  }
  0x40   :  { %1047 = vmatprep.subr.bf16.mxu0 %v2351_v40  ;;  %v2432_v40 = vld [vmem:[%s3558_s1 + $0xa0] ss:$8 sps:$4 sm:$0xff]  }
  0x41   :  { %842 = vmatpush1.bf16.msra.mxu1 %v2432_v40  ;;  %v54_v40 = vld [vmem:[%s3557_s0 + $0xd0] sm:$0xff] }
  0x42   :  { %967 = vmatmul.mubr.bf16.vlgmr.msra.gmra.mrb[0].mxu0 %v142_v47  ;;  %v2376_v47 = vld [vmem:[%s3558_s1 + $0x290] ss:$8 sps:$4 sm:$0xff]   ;;  %843 = vmatprep.subr.bf16.mxu1 %v2433_v41 }
  0x43   :  { %1048 = vmatpush1.bf16.msra.mxu0 %v2349_v48  ;;  %976 = vmatprep.mubr.bf16.mxu0 %v150_v49  ;;  %v100_v48 = vld [vmem:[%s3557_s0 + $0x240] sm:$0xff]  ;;  %v107_v49 = vld [vmem:[%s3557_s0 + $0x278] sm:$0xff] }
  0x44   :  { %1049 = vmatprep.subr.bf16.mxu0 %v2354_v50  ;;  %v2436_v50 = vld [vmem:[%s3558_s1 + $0xc4] ss:$8 sps:$4 sm:$0xff]   ;;  %v177_v57 = vpack.c.bf16 %v107_v49, %v100_v48  ;;  %v63_v48 = vld [vmem:[%s3557_s0 + $0x118] sm:$0xff]  ;;  %v46_v49 = vld [vmem:[%s3557_s0 + $0x90] sm:$0xff] }
  0x45   :  { %844 = vmatpush1.bf16.msra.mxu1 %v2435_v46  ;;  %v152_v46 = vpack.c.bf16 %v54_v40, %v47_v39 }
  0x46   :  { %845 = vmatprep.subr.bf16.mxu1 %v2436_v50  ;;  %v71_v50 = vld [vmem:[%s3557_s0 + $0x158] sm:$0xff] }
  0x47   :  { %1050 = vmatpush1.bf16.msra.mxu0 %v2352_v52  ;;  %v115_v52 = vld [vmem:[%s3557_s0 + $0x2b8] sm:$0xff] }
  0x48   :  { %1051 = vmatprep.subr.bf16.mxu0 %v2357_v56  ;;  %v2379_v56 = vld [vmem:[%s3558_s1 + $0x2a0] ss:$8 sps:$4 sm:$0xff]   ;;  %v185_v60 = vpack.c.bf16 %v122_v53, %v115_v52 }
  0x49   :  { %846 = vmatpush1.bf16.msra.mxu1 %v2438_v54  ;;  %v2454_v52 = vld [vmem:[%s3560_s3 + $0x20] ss:$8 sps:$4 sm:$0xff]  }
  0x4a   :  { %977 = vmatmul.mubr.bf16.gmra.mrb[4].mxu0 %v149_v61  ;;  %v2382_v61 = vld [vmem:[%s3558_s1 + $0x2b0] ss:$8 sps:$4 sm:$0xff]   ;;  %847 = vmatprep.subr.bf16.mxu1 %v2439_v55  ;;  %v53_v53 = vld [vmem:[%s3557_s0 + $0xc8] sm:$0xff]  ;;  %v2459_v55 = vld [vmem:[%s3560_s3 + $0x34] ss:$8 sps:$4 sm:$0xff]  }
  0x4b   :  { %1052 = vmatpush1.bf16.msra.mxu0 %v2355_v62  ;;  %986 = vmatprep.mubr.bf16.mxu0 %v157_v63  ;;  %v114_v62 = vld [vmem:[%s3557_s0 + $0x2b0] sm:$0xff]  ;;  %v121_v63 = vld [vmem:[%s3557_s0 + $0x2e8] sm:$0xff] }
  0x4c   :  { %1053 = vmatprep.subr.bf16.mxu0 %v2360_v0  ;;  %v2442_v0 = vld [vmem:[%s3558_s1 + $0xe4] ss:$8 sps:$4 sm:$0xff]   ;;  %v184_v7 = vpack.c.bf16 %v121_v63, %v114_v62 }
  0x4d   :  { %848 = vmatpush1.bf16.msra.mxu1 %v2441_v59  ;;  %v61_v54 = vld [vmem:[%s3557_s0 + $0x108] sm:$0xff]  ;;  %v2457_v59 = vld [vmem:[%s3560_s3 + $0x30] ss:$8 sps:$4 sm:$0xff]  }
  0x4e   :  { %849 = vmatprep.subr.bf16.mxu1 %v2442_v0 }
  0x4f   :  { %1054 = vmatpush1.bf16.msra.mxu0 %v2358_v2  ;;  %v129_v2 = vld [vmem:[%s3557_s0 + $0x328] sm:$0xff] }
  0x50   :  { %1055 = vmatprep.subr.bf16.mxu0 %v2363_v6  ;;  %v2385_v6 = vld [vmem:[%s3558_s1 + $0x2c0] ss:$8 sps:$4 sm:$0xff]  }
  0x51   :  { %850 = vmatpush1.bf16.msra.mxu1 %v2444_v4 }
  0x52   :  { %987 = vmatmul.mubr.bf16.gmra.mrb[8].mxu0 %v156_v11  ;;  %v35_v11 = vld [vmem:[%s3557_s0 + $0x38] sm:$0xff]  ;;  %851 = vmatprep.subr.bf16.mxu1 %v2445_v5 }
  0x53   :  { %1056 = vmatpush1.bf16.msra.mxu0 %v2361_v12  ;;  %996 = vmatprep.mubr.bf16.mxu0 %v164_v13  ;;  %v192_v12 = vpack.c.bf16 %v136_v3, %v129_v2  ;;  %v2388_v13 = vld [vmem:[%s3558_s1 + $0x2d0] ss:$8 sps:$4 sm:$0xff]   ;;  %v140_v21 = vpack.c.bf16 %v35_v11, %v28_v10 }
  0x54   :  { %1057 = vmatprep.subr.bf16.mxu0 %v2366_v14  ;;  %v128_v14 = vld [vmem:[%s3557_s0 + $0x320] sm:$0xff] }
  0x55   :  { %852 = vmatpush1.bf16.msra.mxu1 %v2447_v9  ;;  %v191_v24 = vpack.c.bf16 %v135_v17, %v128_v14 }
  0x56   :  { %1525 = vmatprep.subr.bf16.mxu1 %v2450_v33 }
  0x57   :  { %1058 = vmatpush1.bf16.msra.mxu0 %v2364_v16  ;;  %v50_v16 = vld [vmem:[%s3557_s0 + $0xb0] sm:$0xff] }
  0x58   :  { %1059 = vmatprep.subr.bf16.mxu0 %v2369_v20  ;;  %v40_v20 = vld [vmem:[%s3557_s0 + $0x60] sm:$0xff]  ;;  %v148_v22 = vpack.c.bf16 %v50_v16, %v43_v15  ;;  %854 = vmatmul.mubr.bf16.vlgmr.msra.gmra.mrb[0].mxu1 %v140_v21 }
  0x59   :  { %1526 = vmatpush1.bf16.msra.mxu1 %v2448_v32 }
  0x5a   :  { %997 = vmatmul.mubr.bf16.gmra.mrb[12].mxu0 %v163_v25  ;;  %v2398_v25 = vld [vmem:[%s3558_s1 + $0x2f4] ss:$8 sps:$4 sm:$0xff]   ;;  %863 = vmatprep.mubr.bf16.mxu1 %v148_v22 }
  0x5b   :  { %1060 = vmatpush1.bf16.msra.mxu0 %v2367_v27  ;;  %1006 = vmatprep.mubr.bf16.mxu0 %v171_v28  ;;  %v49_v27 = vld [vmem:[%s3557_s0 + $0xa8] sm:$0xff]  ;;  %v145_v28 = vpack.c.bf16 %v40_v20, %v33_v19 }
  0x5c   :  { %1061 = vmatprep.subr.bf16.mxu0 %v2372_v30  ;;  %v64_v30 = vld [vmem:[%s3557_s0 + $0x120] sm:$0xff]  ;;  %v147_v36 = vpack.c.bf16 %v49_v27, %v42_v26 }
  0x5d   :  { %v155_v41 = vpack.c.bf16 %v64_v30, %v57_v29 }
  0x5f   :  { %1062 = vmatpush1.bf16.msra.mxu0 %v2370_v34  ;;  %v32_v34 = vld [vmem:[%s3557_s0 + $0x20] sm:$0xff] }
  0x60   :  { %1063 = vmatprep.subr.bf16.mxu0 %v2375_v37  ;;  %v2453_v37 = vld [vmem:[%s3560_s3 + $0x14] ss:$8 sps:$4 sm:$0xff]   ;;  %864 = vmatmul.mubr.bf16.gmra.mrb[4].mxu1 %v147_v36 }
  0x61   :  { %1527 = vmatprep.subr.bf16.mxu1 %v2453_v37  ;;  %873 = vmatprep.mubr.bf16.mxu1 %v155_v41 }
  0x62   :  { %1007 = vmatmul.mubr.bf16.gmra.mrb[16].mxu0 %v170_v42  ;;  %v2451_v42 = vld [vmem:[%s3560_s3 + $0x10] ss:$8 sps:$4 sm:$0xff]  }
  0x63   :  { %1064 = vmatpush1.bf16.msra.mxu0 %v2373_v43  ;;  %1016 = vmatprep.mubr.bf16.mxu0 %v178_v44  ;;  %v144_v43 = vpack.c.bf16 %v39_v35, %v32_v34  ;;  %v2456_v44 = vld [vmem:[%s3560_s3 + $0x24] ss:$8 sps:$4 sm:$0xff]  }
  0x64   :  { %1065 = vmatprep.subr.bf16.mxu0 %v2378_v45  ;;  %v2402_v45 = vld [vmem:[%s3558_s1 + $0x300] ss:$8 sps:$4 sm:$0xff]   ;;  %1528 = vmatpush1.bf16.msra.mxu1 %v2451_v42 }
  0x65   :  { %1529 = vmatprep.subr.bf16.mxu1 %v2456_v44 }
  0x67   :  { %1066 = vmatpush1.bf16.msra.mxu0 %v2376_v47  ;;  %v56_v47 = vld [vmem:[%s3557_s0 + $0xe0] sm:$0xff] }
  0x68   :  { %1067 = vmatprep.subr.bf16.mxu0 %v2381_v51  ;;  %v78_v51 = vld [vmem:[%s3557_s0 + $0x190] sm:$0xff]  ;;  %1530 = vmatpush1.bf16.msra.mxu1 %v2454_v52 }
  0x6a   :  { %1017 = vmatmul.mubr.bf16.gmra.mrb[20].mxu0 %v177_v57  ;;  %v154_v57 = vpack.c.bf16 %v63_v48, %v56_v47 }
  0x6b   :  { %1068 = vmatpush1.bf16.msra.mxu0 %v2379_v56  ;;  %1026 = vmatprep.mubr.bf16.mxu0 %v185_v60  ;;  %v68_v56 = vld [vmem:[%s3557_s0 + $0x140] sm:$0xff] }
  0x6c   :  { %1069 = vmatprep.subr.bf16.mxu0 %v2384_v58  ;;  %v162_v58 = vpack.c.bf16 %v78_v51, %v71_v50 }
  0x6f   :  { %1070 = vmatpush1.bf16.msra.mxu0 %v2382_v61 }
  0x70   :  { %1071 = vmatprep.subr.bf16.mxu0 %v2387_v1 }
  0x72   :  { %1027 = vmatmul.mubr.bf16.gmra.mrb[24].mxu0 %v184_v7 }
  0x73   :  { %1072 = vmatpush1.bf16.msra.mxu0 %v2385_v6  ;;  %1036 = vmatprep.mubr.bf16.mxu0 %v192_v12 }
  0x74   :  { %1073 = vmatprep.subr.bf16.mxu0 %v2390_v8 }
  0x77   :  { %1074 = vmatpush1.bf16.msra.mxu0 %v2388_v13 }
  0x78   :  { %1075 = vmatprep.subr.bf16.mxu0 %v2393_v18 }
  0x7a   :  { %1037 = vmatmul.mubr.bf16.gmra.mrb[28].mxu0 %v191_v24 }
  0x7b   :  { %1076 = vmatpush1.bf16.msra.mxu0 %v2391_v23  ;;  %1079 = vmatprep.mubr.bf16.mxu0 %v145_v28 }
  0x7c   :  { %1077 = vmatprep.subr.bf16.mxu0 %v2398_v25 }
  0x7f   :  { %1078 = vmatpush1.bf16.msra.mxu0 %v2396_v31 }
  0x80   :  { %1160 = vmatprep.subr.bf16.mxu0 %v2404_v38 }
  0x82   :  { %1080 = vmatmul.mubr.bf16.vlgmr.msra.gmra.mrb[0].mxu0 %v144_v43 }
  0x83   :  { %1161 = vmatpush1.bf16.msra.mxu0 %v2402_v45  ;;  %1089 = vmatprep.mubr.bf16.mxu0 %v152_v46 }
  0x84   :  { %12 = vsyncpa [#allocation3], 0  ;;  %v151_v60 = vpack.c.bf16 %v53_v53, %v46_v49  ;;  %1531 = vmatprep.subr.bf16.mxu1 %v2459_v55  ;;  %v2462_v61 = vld [vmem:[%s3560_s3 + $0x44] ss:$8 sps:$4 sm:$0xff]   ;;  %v159_v62 = vpack.c.bf16 %v68_v56, %v61_v54  ;;  %874 = vmatmul.mubr.bf16.gmra.mrb[8].mxu1 %v154_v57  ;;  %v70_v63 = vld [vmem:[%s3557_s0 + $0x150] sm:$0xff]  ;;  %vm796_vm0 = vcmask 130048  }
  0x85   :  { %883 = vmatprep.mubr.bf16.mxu1 %v162_v58  ;;  %v77_v0 = vld [vmem:[%s3557_s0 + $0x188] sm:$0xff]  ;;  %v92_v2 = vld [vmem:[%s3557_s0 + $0x200] sm:$0xff]  ;;  %1532 = vmatpush1.bf16.msra.mxu1 %v2457_v59  ;;  %v2465_v4 = vld [vmem:[%s3560_s3 + $0x54] ss:$8 sps:$4 sm:$0xff]  }
  0x86   :  { %v85_v1 = vld [vmem:[%s3557_s0 + $0x1c8] sm:$0xff]  ;;  %1533 = vmatprep.subr.bf16.mxu1 %v2462_v61  ;;  %v60_v5 = vld [vmem:[%s3557_s0 + $0x100] sm:$0xff]  ;;  %v67_v6 = vld [vmem:[%s3557_s0 + $0x138] sm:$0xff]  ;;  %v161_v7 = vpack.c.bf16 %v77_v0, %v70_v63 }
  0x87   :  { %v2460_v3 = vld [vmem:[%s3560_s3 + $0x40] ss:$8 sps:$4 sm:$0xff]   ;;  %v75_v8 = vld [vmem:[%s3557_s0 + $0x178] sm:$0xff]  ;;  %v82_v9 = vld [vmem:[%s3557_s0 + $0x1b0] sm:$0xff]  ;;  %v169_v10 = vpack.c.bf16 %v92_v2, %v85_v1  ;;  %v158_v12 = vpack.c.bf16 %v67_v6, %v60_v5 }
  0x88   :  { %v2463_v11 = vld [vmem:[%s3560_s3 + $0x50] ss:$8 sps:$4 sm:$0xff]   ;;  %v2468_v13 = vld [vmem:[%s3560_s3 + $0x64] ss:$8 sps:$4 sm:$0xff]   ;;  %v166_v14 = vpack.c.bf16 %v82_v9, %v75_v8  ;;  %v2466_v19 = vld [vmem:[%s3560_s3 + $0x60] ss:$8 sps:$4 sm:$0xff]  }
  0x89   :  { %1534 = vmatpush1.bf16.msra.mxu1 %v2460_v3  ;;  %v84_v15 = vld [vmem:[%s3557_s0 + $0x1c0] sm:$0xff]  ;;  %v91_v16 = vld [vmem:[%s3557_s0 + $0x1f8] sm:$0xff]  ;;  %v106_v18 = vld [vmem:[%s3557_s0 + $0x270] sm:$0xff] }
  0x8a   :  { %1090 = vmatmul.mubr.bf16.gmra.mrb[4].mxu0 %v151_v60  ;;  %1535 = vmatprep.subr.bf16.mxu1 %v2465_v4  ;;  %v99_v17 = vld [vmem:[%s3557_s0 + $0x238] sm:$0xff]  ;;  %v74_v21 = vld [vmem:[%s3557_s0 + $0x170] sm:$0xff]  ;;  %v81_v22 = vld [vmem:[%s3557_s0 + $0x1a8] sm:$0xff]  ;;  %v168_v23 = vpack.c.bf16 %v91_v16, %v84_v15 }
  0x8b   :  { %1099 = vmatprep.mubr.bf16.mxu0 %v159_v62  ;;  %v2471_v20 = vld [vmem:[%s3560_s3 + $0x74] ss:$8 sps:$4 sm:$0xff]   ;;  %v89_v24 = vld [vmem:[%s3557_s0 + $0x1e8] sm:$0xff]  ;;  %v96_v25 = vld [vmem:[%s3557_s0 + $0x220] sm:$0xff]  ;;  %v176_v26 = vpack.c.bf16 %v106_v18, %v99_v17  ;;  %v165_v28 = vpack.c.bf16 %v81_v22, %v74_v21 }
  0x8c   :  { %884 = vmatmul.mubr.bf16.gmra.mrb[12].mxu1 %v161_v7  ;;  %v2469_v27 = vld [vmem:[%s3560_s3 + $0x70] ss:$8 sps:$4 sm:$0xff]   ;;  %v2474_v29 = vld [vmem:[%s3560_s3 + $0x84] ss:$8 sps:$4 sm:$0xff]   ;;  %v173_v30 = vpack.c.bf16 %v96_v25, %v89_v24  ;;  %v2472_v35 = vld [vmem:[%s3560_s3 + $0x80] ss:$8 sps:$4 sm:$0xff]  }
  0x8d   :  { %893 = vmatprep.mubr.bf16.mxu1 %v169_v10  ;;  %1536 = vmatpush1.bf16.msra.mxu1 %v2463_v11  ;;  %v98_v31 = vld [vmem:[%s3557_s0 + $0x230] sm:$0xff]  ;;  %v105_v32 = vld [vmem:[%s3557_s0 + $0x268] sm:$0xff]  ;;  %v120_v34 = vld [vmem:[%s3557_s0 + $0x2e0] sm:$0xff] }
  0x8e   :  { %1537 = vmatprep.subr.bf16.mxu1 %v2468_v13  ;;  %v113_v33 = vld [vmem:[%s3557_s0 + $0x2a8] sm:$0xff]  ;;  %v2477_v36 = vld [vmem:[%s3560_s3 + $0x94] ss:$8 sps:$4 sm:$0xff]   ;;  %v88_v37 = vld [vmem:[%s3557_s0 + $0x1e0] sm:$0xff]  ;;  %v175_v39 = vpack.c.bf16 %v105_v32, %v98_v31 }
  0x8f   :  { %v95_v38 = vld [vmem:[%s3557_s0 + $0x218] sm:$0xff]  ;;  %v110_v41 = vld [vmem:[%s3557_s0 + $0x290] sm:$0xff]  ;;  %v183_v42 = vpack.c.bf16 %v120_v34, %v113_v33  ;;  %v2480_v45 = vld [vmem:[%s3560_s3 + $0xa4] ss:$8 sps:$4 sm:$0xff]  }
  0x90   :  { %v103_v40 = vld [vmem:[%s3557_s0 + $0x258] sm:$0xff]  ;;  %v172_v44 = vpack.c.bf16 %v95_v38, %v88_v37  ;;  %v112_v47 = vld [vmem:[%s3557_s0 + $0x2a0] sm:$0xff]  ;;  %v134_v50 = vld [vmem:[%s3557_s0 + $0x350] sm:$0xff] }
  0x91   :  { %1538 = vmatpush1.bf16.msra.mxu1 %v2466_v19  ;;  %v2475_v43 = vld [vmem:[%s3560_s3 + $0x90] ss:$8 sps:$4 sm:$0xff]   ;;  %v180_v46 = vpack.c.bf16 %v110_v41, %v103_v40  ;;  %v2478_v51 = vld [vmem:[%s3560_s3 + $0xa0] ss:$8 sps:$4 sm:$0xff]   ;;  %v2483_v52 = vld [vmem:[%s3560_s3 + $0xb4] ss:$8 sps:$4 sm:$0xff]  }
  0x92   :  { %1100 = vmatmul.mubr.bf16.gmra.mrb[8].mxu0 %v158_v12  ;;  %1539 = vmatprep.subr.bf16.mxu1 %v2471_v20  ;;  %v119_v48 = vld [vmem:[%s3557_s0 + $0x2d8] sm:$0xff]  ;;  %v102_v53 = vld [vmem:[%s3557_s0 + $0x250] sm:$0xff]  ;;  %v109_v54 = vld [vmem:[%s3557_s0 + $0x288] sm:$0xff]  ;;  %v2536_v12 = vmov 0  }
  0x93   :  { %1109 = vmatprep.mubr.bf16.mxu0 %v166_v14  ;;  %v127_v49 = vld [vmem:[%s3557_s0 + $0x318] sm:$0xff]  ;;  %v182_v55 = vpack.c.bf16 %v119_v48, %v112_v47  ;;  %v117_v56 = vld [vmem:[%s3557_s0 + $0x2c8] sm:$0xff]  ;;  %v124_v57 = vld [vmem:[%s3557_s0 + $0x300] sm:$0xff]  ;;  %v179_v60 = vpack.c.bf16 %v109_v54, %v102_v53 }
  0x94   :  { %894 = vmatmul.mubr.bf16.gmra.mrb[16].mxu1 %v168_v23  ;;  %v190_v58 = vpack.c.bf16 %v134_v50, %v127_v49  ;;  %v2481_v59 = vld [vmem:[%s3560_s3 + $0xb0] ss:$8 sps:$4 sm:$0xff]   ;;  %v2486_v61 = vld [vmem:[%s3560_s3 + $0xc4] ss:$8 sps:$4 sm:$0xff]   ;;  %v187_v62 = vpack.c.bf16 %v124_v57, %v117_v56  ;;  %v2484_v1 = vld [vmem:[%s3560_s3 + $0xc0] ss:$8 sps:$4 sm:$0xff]  }
  0x95   :  { %903 = vmatprep.mubr.bf16.mxu1 %v176_v26  ;;  %1540 = vmatpush1.bf16.msra.mxu1 %v2469_v27  ;;  %v126_v63 = vld [vmem:[%s3557_s0 + $0x310] sm:$0xff]  ;;  %v133_v0 = vld [vmem:[%s3557_s0 + $0x348] sm:$0xff]  ;;  %v116_v2 = vld [vmem:[%s3557_s0 + $0x2c0] sm:$0xff] }
  0x96   :  { %1541 = vmatprep.subr.bf16.mxu1 %v2474_v29  ;;  %v123_v3 = vld [vmem:[%s3557_s0 + $0x2f8] sm:$0xff]  ;;  %v189_v4 = vpack.c.bf16 %v133_v0, %v126_v63  ;;  %v138_v6 = vld [vmem:[%s3557_s0 + $0x370] sm:$0xff]  ;;  %v137_v10 = vld [vmem:[%s3557_s0 + $0x368] sm:$0xff] }
  0x97   :  { %v131_v5 = vld [vmem:[%s3557_s0 + $0x338] sm:$0xff]  ;;  %v186_v7 = vpack.c.bf16 %v123_v3, %v116_v2  ;;  %v130_v9 = vld [vmem:[%s3557_s0 + $0x330] sm:$0xff]  ;;  %v41_v14 = vld [vmem:[%s3557_s0 + $0x68] sm:$0xff] }
  0x98   :  { %v194_v8 = vpack.c.bf16 %v138_v6, %v131_v5  ;;  %v193_v11 = vpack.c.bf16 %v137_v10, %v130_v9  ;;  %v34_v13 = vld [vmem:[%s3557_s0 + $0x30] sm:$0xff]  ;;  %v48_v16 = vld [vmem:[%s3557_s0 + $0xa0] sm:$0xff]  ;;  %v55_v17 = vld [vmem:[%s3557_s0 + $0xd8] sm:$0xff] }
  0x99   :  { %1542 = vmatpush1.bf16.msra.mxu1 %v2472_v35  ;;  %v146_v15 = vpack.c.bf16 %v41_v14, %v34_v13  ;;  %v153_v18 = vpack.c.bf16 %v55_v17, %v48_v16  ;;  %v62_v19 = vld [vmem:[%s3557_s0 + $0x110] sm:$0xff]  ;;  %v69_v20 = vld [vmem:[%s3557_s0 + $0x148] sm:$0xff]  ;;  %v76_v24 = vld [vmem:[%s3557_s0 + $0x180] sm:$0xff] }
  0x9a   :  { %1110 = vmatmul.mubr.bf16.gmra.mrb[12].mxu0 %v165_v28  ;;  %1543 = vmatprep.subr.bf16.mxu1 %v2477_v36  ;;  %v160_v21 = vpack.c.bf16 %v69_v20, %v62_v19  ;;  %v2487_v22 = vld [vmem:[%s3560_s3 + $0xd0] ss:$8 sps:$4 sm:$0xff]   ;;  %v2489_v23 = vld [vmem:[%s3560_s3 + $0xd4] ss:$8 sps:$4 sm:$0xff]   ;;  %v97_v28 = vld [vmem:[%s3557_s0 + $0x228] sm:$0xff] }
  0x9b   :  { %1119 = vmatprep.mubr.bf16.mxu0 %v173_v30  ;;  %v83_v25 = vld [vmem:[%s3557_s0 + $0x1b8] sm:$0xff]  ;;  %v90_v27 = vld [vmem:[%s3557_s0 + $0x1f0] sm:$0xff]  ;;  %v104_v30 = vld [vmem:[%s3557_s0 + $0x260] sm:$0xff] }
  0x9c   :  { %904 = vmatmul.mubr.bf16.gmra.mrb[20].mxu1 %v175_v39  ;;  %v167_v26 = vpack.c.bf16 %v83_v25, %v76_v24  ;;  %v174_v29 = vpack.c.bf16 %v97_v28, %v90_v27  ;;  %v111_v31 = vld [vmem:[%s3557_s0 + $0x298] sm:$0xff]  ;;  %v118_v33 = vld [vmem:[%s3557_s0 + $0x2d0] sm:$0xff]  ;;  %v125_v34 = vld [vmem:[%s3557_s0 + $0x308] sm:$0xff] }
  0x9d   :  { %913 = vmatprep.mubr.bf16.mxu1 %v183_v42  ;;  %1544 = vmatpush1.bf16.msra.mxu1 %v2475_v43  ;;  %v181_v32 = vpack.c.bf16 %v111_v31, %v104_v30  ;;  %v188_v35 = vpack.c.bf16 %v125_v34, %v118_v33  ;;  %v132_v36 = vld [vmem:[%s3557_s0 + $0x340] sm:$0xff]  ;;  %v139_v37 = vld [vmem:[%s3557_s0 + $0x378] sm:$0xff] }
  0x9e   :  { %1545 = vmatprep.subr.bf16.mxu1 %v2480_v45  ;;  %v195_v38 = vpack.c.bf16 %v139_v37, %v132_v36  ;;  %v2492_v39 = vld [vmem:[%s3560_s3 + $0xe4] ss:$8 sps:$4 sm:$0xff]   ;;  %v2490_v40 = vld [vmem:[%s3560_s3 + $0xe0] ss:$8 sps:$4 sm:$0xff]   ;;  %v2495_v41 = vld [vmem:[%s3560_s3 + $0xf4] ss:$8 sps:$4 sm:$0xff]  }
  0x9f   :  { %v2493_v42 = vld [vmem:[%s3560_s3 + $0xf0] ss:$8 sps:$4 sm:$0xff]  }
  0xa1   :  { %1546 = vmatpush1.bf16.msra.mxu1 %v2478_v51  ;;  %v2496_v51 = vld [vmem:[%s3562_s5 + $0x40] sm:$0xff]  }
  0xa2   :  { %1120 = vmatmul.mubr.bf16.gmra.mrb[16].mxu0 %v172_v44  ;;  %1547 = vmatprep.subr.bf16.mxu1 %v2483_v52 }
  0xa3   :  { %1129 = vmatprep.mubr.bf16.mxu0 %v180_v46 }
  0xa4   :  { %914 = vmatmul.mubr.bf16.gmra.mrb[24].mxu1 %v182_v55 }
  0xa5   :  { %923 = vmatprep.mubr.bf16.mxu1 %v190_v58  ;;  %1548 = vmatpush1.bf16.msra.mxu1 %v2481_v59 }
  0xa6   :  { %1549 = vmatprep.subr.bf16.mxu1 %v2486_v61 }
  0xa9   :  { %1550 = vmatpush1.bf16.msra.mxu1 %v2484_v1 }
  0xaa   :  { %1130 = vmatmul.mubr.bf16.gmra.mrb[20].mxu0 %v179_v60  ;;  %1551 = vmatprep.subr.bf16.mxu1 %v2489_v23 }
  0xab   :  { %1139 = vmatprep.mubr.bf16.mxu0 %v187_v62 }
  0xac   :  { %924 = vmatmul.mubr.bf16.gmra.mrb[28].mxu1 %v189_v4 }
  0xad   :  { %1552 = vmatpush1.bf16.msra.mxu1 %v2487_v22 }
  0xae   :  { %1553 = vmatprep.subr.bf16.mxu1 %v2492_v39 }
  0xb1   :  { %1554 = vmatpush1.bf16.msra.mxu1 %v2490_v40  ;;  %v2497_v40 = vld [vmem:[%s3562_s5] sm:$0xff]  }
  0xb2   :  { %1140 = vmatmul.mubr.bf16.gmra.mrb[24].mxu0 %v186_v7  ;;  %1555 = vmatprep.subr.bf16.mxu1 %v2495_v41 }
  0xb3   :  { %1149 = vmatprep.mubr.bf16.mxu0 %v194_v8  ;;  %v296_v8 = vlaneseq }
  0xb5   :  { %1556 = vmatpush1.bf16.msra.mxu1 %v2493_v42  ;;  %v3365_v13 = vshrl.u32 %v296_v8, 7 }
  0xb6   :  { %2105 = vmatprep.subr.bf16.mxu1 %v2496_v51 }
  0xb7   :  { %v298_v14 = vsub.s32 0, %v3365_v13  ;;  %v302_v16 = vsub.s32 1, %v3365_v13 }
  0xba   :  { %1150 = vmatmul.mubr.bf16.gmra.mrb[28].mxu0 %v193_v11 }
  0xbb   :  { %1192 = vmatprep.mubr.bf16.mxu0 %v2536_v12 }
  0xc2   :  { %2048 = vmatmul.mubr.msk.bf16.vlgmr.msra.gmra.mrb[0].mxu0 %vm796_vm0, %v146_v15  ;;  %v294_v15 = vld [vmem:[%s3559_s2] sm:$0x3] }
  0xc3   :  { %1202 = vmatprep.mubr.bf16.mxu0 %v2536_v12  ;;  %v3374_v17 = vrot.slane %v294_v15, %v298_v14 }
  0xca   :  { %2049 = vmatmul.mubr.msk.bf16.gmra.mrb[4].mxu0 %vm796_vm0, %v153_v18  ;;  %v3378_v18 = vrot.slane %v294_v15, %v302_v16 }
  0xcb   :  { %1212 = vmatprep.mubr.bf16.mxu0 %v2536_v12 }
  0xd2   :  { %2050 = vmatmul.mubr.msk.bf16.gmra.mrb[8].mxu0 %vm796_vm0, %v160_v21 }
  0xd3   :  { %1222 = vmatprep.mubr.bf16.mxu0 %v2536_v12 }
  0xda   :  { %2051 = vmatmul.mubr.msk.bf16.gmra.mrb[12].mxu0 %vm796_vm0, %v167_v26 }
  0xdb   :  { %1232 = vmatprep.mubr.bf16.mxu0 %v2536_v12 }
  0xe2   :  { %2052 = vmatmul.mubr.msk.bf16.gmra.mrb[16].mxu0 %vm796_vm0, %v174_v29 }
  0xe3   :  { %1242 = vmatprep.mubr.bf16.mxu0 %v2536_v12 }
  0xea   :  { %2053 = vmatmul.mubr.msk.bf16.gmra.mrb[20].mxu0 %vm796_vm0, %v181_v32 }
  0xeb   :  { %1252 = vmatprep.mubr.bf16.mxu0 %v2536_v12 }
  0xf2   :  { %2054 = vmatmul.mubr.msk.bf16.gmra.mrb[24].mxu0 %vm796_vm0, %v188_v35 }
  0xf3   :  { %1262 = vmatprep.mubr.bf16.mxu0 %v2536_v12 }
  0xfa   :  { %2055 = vmatmul.mubr.msk.bf16.gmra.mrb[28].mxu0 %vm796_vm0, %v195_v38 }
 0x12b   :  { %v855_v43 = vpop.f32.mrb[0].mxu1 }
 0x12c   :  { %v857_v44 = vpop.f32.mrb[1].mxu1  ;;  %v856_v19 = vadd.f32 %v855_v43, %v3374_v17 }
 0x12d   :  { %v859_v45 = vpop.f32.mrb[2].mxu1  ;;  %v858_v20 = vadd.f32 %v857_v44, %v3378_v18  ;;  %v2498_v44 = vld [vmem:[%s3562_s5 + $0x48] sm:$0xff]  }
 0x12e   :  { %v861_v46 = vpop.f32.mrb[3].mxu1  ;;  %v860_v22 = vadd.f32 %v859_v45, %v3374_v17 }
 0x12f   :  { %v862_v25 = vadd.f32 %v861_v46, %v3378_v18 }
 0x133   :  { %v865_v47 = vpop.f32.mrb[4].mxu1 }
 0x134   :  { %v867_v48 = vpop.f32.mrb[5].mxu1  ;;  %v866_v33 = vadd.f32 %v865_v47, %v3374_v17 }
 0x135   :  { %v869_v49 = vpop.f32.mrb[6].mxu1  ;;  %v868_v36 = vadd.f32 %v867_v48, %v3378_v18 }
 0x136   :  { %v871_v50 = vpop.f32.mrb[7].mxu1  ;;  %v870_v41 = vadd.f32 %v869_v49, %v3374_v17  ;;  %v2499_v49 = vld [vmem:[%s3562_s5 + $0x8] sm:$0xff]  }
 0x137   :  { %v872_v45 = vadd.f32 %v871_v50, %v3378_v18  ;;  %v2500_v50 = vld [vmem:[%s3562_s5 + $0x50] sm:$0xff]  }
 0x157   :  { %v3317_v52 = vpop.f32.mrb[8].mxu1 }
 0x158   :  { %v3319_v53 = vpop.f32.mrb[9].mxu1 }
 0x159   :  { %v3321_v54 = vpop.f32.mrb[10].mxu1 }
 0x15a   :  { %v3323_v55 = vpop.f32.mrb[11].mxu1 }
 0x15f   :  { %v3325_v56 = vpop.f32.mrb[12].mxu1 }
 0x160   :  { %v3327_v57 = vpop.f32.mrb[13].mxu1 }
 0x161   :  { %v3329_v58 = vpop.f32.mrb[14].mxu1 }
 0x162   :  { %v3331_v59 = vpop.f32.mrb[15].mxu1 }
 0x167   :  { %v3333_v60 = vpop.f32.mrb[16].mxu1 }
 0x168   :  { %v3335_v61 = vpop.f32.mrb[17].mxu1 }
 0x169   :  { %v3337_v62 = vpop.f32.mrb[18].mxu1 }
 0x16a   :  { %v3339_v63 = vpop.f32.mrb[19].mxu1 }
 0x16f   :  { %v3341_v0 = vpop.f32.mrb[20].mxu1 }
 0x170   :  { %v3343_v1 = vpop.f32.mrb[21].mxu1 }
 0x171   :  { %v3345_v2 = vpop.f32.mrb[22].mxu1 }
 0x172   :  { %v3347_v3 = vpop.f32.mrb[23].mxu1 }
 0x177   :  { %v3349_v4 = vpop.f32.mrb[24].mxu1 }
 0x178   :  { %v3351_v5 = vpop.f32.mrb[25].mxu1 }
 0x179   :  { %v3353_v6 = vpop.f32.mrb[26].mxu1 }
 0x17a   :  { %v3355_v7 = vpop.f32.mrb[27].mxu1 }
 0x17f   :  { %v3357_v9 = vpop.f32.mrb[28].mxu1 }
 0x180   :  { %v3359_v10 = vpop.f32.mrb[29].mxu1 }
 0x181   :  { %v3361_v11 = vpop.f32.mrb[30].mxu1 }
 0x182   :  { %v3363_v12 = vpop.f32.mrb[31].mxu1 }
 0x195   :  { %v1194_v21 = vpop.f32.mrb[0].mxu0 }
 0x196   :  { %v2170_v23 = vadd.f32 %v1194_v21, %v856_v19  ;;  %v1196_v24 = vpop.f32.mrb[1].mxu0 }
 0x197   :  { %v2172_v26 = vadd.f32 %v1196_v24, %v858_v20  ;;  %v1198_v27 = vpop.f32.mrb[2].mxu0  ;;  %v876_v20 = vadd.f32 %v3317_v52, %v3374_v17  ;;  %v880_v52 = vadd.f32 %v3321_v54, %v3374_v17  ;;  %v2503_v54 = vld [vmem:[%s3562_s5 + $0x18] sm:$0xff]  }
 0x198   :  { %v2174_v28 = vadd.f32 %v1198_v27, %v860_v22  ;;  %v1200_v29 = vpop.f32.mrb[3].mxu0  ;;  %v1273_v31 = vmax.f32 %v2170_v23, 0.0  ;;  %v878_v23 = vadd.f32 %v3319_v53, %v3378_v18  ;;  %v2501_v27 = vld [vmem:[%s3562_s5 + $0x10] sm:$0xff]   ;;  %v882_v53 = vadd.f32 %v3323_v55, %v3378_v18  ;;  %v2504_v55 = vld [vmem:[%s3562_s5 + $0x60] sm:$0xff]  }
 0x199   :  { %v2176_v30 = vadd.f32 %v1200_v29, %v862_v25  ;;  %v1274_v34 = vmax.f32 %v2172_v26, 0.0 }
 0x19a   :  { %v1275_v32 = vmax.f32 %v2174_v28, 0.0 }
 0x19b   :  { %v1276_v35 = vmax.f32 %v2176_v30, 0.0  ;;  %v2502_v30 = vld [vmem:[%s3562_s5 + $0x58] sm:$0xff]  }
 0x19c   :  { %v1305_v37 = vpack.c.bf16 %v1275_v32, %v1273_v31 }
 0x19d   :  { %v1306_v38 = vpack.c.bf16 %v1276_v35, %v1274_v34  ;;  %v1204_v39 = vpop.f32.mrb[4].mxu0 }
 0x19e   :  { %v2178_v42 = vadd.f32 %v1204_v39, %v866_v33  ;;  %v1206_v43 = vpop.f32.mrb[5].mxu0 }
 0x19f   :  { %v2180_v46 = vadd.f32 %v1206_v43, %v868_v36  ;;  %v1208_v47 = vpop.f32.mrb[6].mxu0  ;;  %1557 = vmatprep.mubr.bf16.mxu1 %v1306_v38  ;;  %v886_v38 = vadd.f32 %v3325_v56, %v3374_v17  ;;  %v890_v56 = vadd.f32 %v3329_v58, %v3374_v17  ;;  %v2507_v58 = vld [vmem:[%s3562_s5 + $0x28] sm:$0xff]  }
 0x1a0   :  { %v2182_v48 = vadd.f32 %v1208_v47, %v870_v41  ;;  %v1210_v51 = vpop.f32.mrb[7].mxu0  ;;  %1558 = vmatmul.mubr.bf16.vlgmr.msra.gmra.mrb[32].mxu1 %v1305_v37  ;;  %v1277_v15 = vmax.f32 %v2178_v42, 0.0  ;;  %v888_v41 = vadd.f32 %v3327_v57, %v3378_v18  ;;  %v892_v57 = vadd.f32 %v3331_v59, %v3378_v18  ;;  %v2508_v59 = vld [vmem:[%s3562_s5 + $0x70] sm:$0xff]  }
 0x1a1   :  { %v2184_v8 = vadd.f32 %v1210_v51, %v872_v45  ;;  %2106 = vmatpush3.bf16.msra.mxu1 %v2497_v40  ;;  %v1278_v21 = vmax.f32 %v2180_v46, 0.0  ;;  %v2505_v45 = vld [vmem:[%s3562_s5 + $0x20] sm:$0xff]  }
 0x1a2   :  { %v1279_v19 = vmax.f32 %v2182_v48, 0.0  ;;  %2107 = vmatprep.subr.bf16.mxu1 %v2498_v44  ;;  %v2506_v48 = vld [vmem:[%s3562_s5 + $0x68] sm:$0xff]  }
 0x1a3   :  { %v1280_v22 = vmax.f32 %v2184_v8, 0.0 }
 0x1a4   :  { %v1307_v24 = vpack.c.bf16 %v1279_v19, %v1277_v15 }
 0x1a5   :  { %v1308_v25 = vpack.c.bf16 %v1280_v22, %v1278_v21  ;;  %v1214_v26 = vpop.f32.mrb[8].mxu0  ;;  %2108 = vmatpush3.bf16.msra.mxu1 %v2499_v49  ;;  %v896_v21 = vadd.f32 %v3333_v60, %v3374_v17  ;;  %v900_v60 = vadd.f32 %v3337_v62, %v3374_v17 }
 0x1a6   :  { %v2186_v28 = vadd.f32 %v1214_v26, %v876_v20  ;;  %v1216_v29 = vpop.f32.mrb[9].mxu0  ;;  %2109 = vmatprep.subr.bf16.mxu1 %v2500_v50 }
 0x1a7   :  { %v2188_v31 = vadd.f32 %v1216_v29, %v878_v23  ;;  %v1218_v32 = vpop.f32.mrb[10].mxu0  ;;  %1567 = vmatprep.mubr.bf16.mxu1 %v1308_v25 }
 0x1a8   :  { %v2190_v33 = vadd.f32 %v1218_v32, %v880_v52  ;;  %v1220_v34 = vpop.f32.mrb[11].mxu0  ;;  %1568 = vmatmul.mubr.bf16.gmra.mrb[36].mxu1 %v1307_v24  ;;  %v1281_v36 = vmax.f32 %v2186_v28, 0.0  ;;  %v898_v24 = vadd.f32 %v3335_v61, %v3378_v18  ;;  %v2509_v52 = vld [vmem:[%s3562_s5 + $0x30] sm:$0xff]  }
 0x1a9   :  { %v2192_v35 = vadd.f32 %v1220_v34, %v882_v53  ;;  %2110 = vmatpush3.bf16.msra.mxu1 %v2501_v27  ;;  %v1282_v39 = vmax.f32 %v2188_v31, 0.0 }
 0x1aa   :  { %v1283_v37 = vmax.f32 %v2190_v33, 0.0  ;;  %2111 = vmatprep.subr.bf16.mxu1 %v2502_v30  ;;  %v902_v30 = vadd.f32 %v3339_v63, %v3378_v18 }
 0x1ab   :  { %v1284_v40 = vmax.f32 %v2192_v35, 0.0 }
 0x1ac   :  { %v1309_v42 = vpack.c.bf16 %v1283_v37, %v1281_v36  ;;  %v908_v37 = vadd.f32 %v3343_v1, %v3378_v18 }
 0x1ad   :  { %v1310_v43 = vpack.c.bf16 %v1284_v40, %v1282_v39  ;;  %v1224_v44 = vpop.f32.mrb[12].mxu0  ;;  %2112 = vmatpush3.bf16.msra.mxu1 %v2503_v54  ;;  %v906_v54 = vadd.f32 %v3341_v0, %v3374_v17  ;;  %v910_v39 = vadd.f32 %v3345_v2, %v3374_v17  ;;  %v918_v2 = vadd.f32 %v3351_v5, %v3378_v18 }
 0x1ae   :  { %v2194_v46 = vadd.f32 %v1224_v44, %v886_v38  ;;  %v1226_v47 = vpop.f32.mrb[13].mxu0  ;;  %2113 = vmatprep.subr.bf16.mxu1 %v2504_v55 }
 0x1af   :  { %v2196_v51 = vadd.f32 %v1226_v47, %v888_v41  ;;  %v1228_v8 = vpop.f32.mrb[14].mxu0  ;;  %1577 = vmatprep.mubr.bf16.mxu1 %v1310_v43  ;;  %v916_v47 = vadd.f32 %v3349_v4, %v3374_v17 }
 0x1b0   :  { %v2198_v49 = vadd.f32 %v1228_v8, %v890_v56  ;;  %v1230_v15 = vpop.f32.mrb[15].mxu0  ;;  %1578 = vmatmul.mubr.bf16.gmra.mrb[40].mxu1 %v1309_v42  ;;  %v1285_v20 = vmax.f32 %v2194_v46, 0.0  ;;  %v912_v42 = vadd.f32 %v3347_v3, %v3378_v18 }
 0x1b1   :  { %v2200_v19 = vadd.f32 %v1230_v15, %v892_v57  ;;  %2114 = vmatpush3.bf16.msra.mxu1 %v2505_v45  ;;  %v1286_v22 = vmax.f32 %v2196_v51, 0.0 }
 0x1b2   :  { %v1287_v50 = vmax.f32 %v2198_v49, 0.0  ;;  %2115 = vmatprep.subr.bf16.mxu1 %v2506_v48  ;;  %v920_v49 = vadd.f32 %v3353_v6, %v3374_v17  ;;  %v928_v6 = vadd.f32 %v3359_v10, %v3378_v18 }
 0x1b3   :  { %v1288_v23 = vmax.f32 %v2200_v19, 0.0 }
 0x1b4   :  { %v1311_v25 = vpack.c.bf16 %v1287_v50, %v1285_v20 }
 0x1b5   :  { %v1312_v26 = vpack.c.bf16 %v1288_v23, %v1286_v22  ;;  %v1234_v27 = vpop.f32.mrb[16].mxu0  ;;  %2116 = vmatpush3.bf16.msra.mxu1 %v2507_v58  ;;  %v922_v58 = vadd.f32 %v3355_v7, %v3378_v18  ;;  %v926_v23 = vadd.f32 %v3357_v9, %v3374_v17 }
 0x1b6   :  { %v2202_v28 = vadd.f32 %v1234_v27, %v896_v21  ;;  %v1236_v29 = vpop.f32.mrb[17].mxu0  ;;  %2117 = vmatprep.subr.bf16.mxu1 %v2508_v59 }
 0x1b7   :  { %v2204_v53 = vadd.f32 %v1236_v29, %v898_v24  ;;  %v1238_v31 = vpop.f32.mrb[18].mxu0  ;;  %1587 = vmatprep.mubr.bf16.mxu1 %v1312_v26  ;;  %v932_v29 = vadd.f32 %v3363_v12, %v3378_v18  ;;  %v2511_v12 = vld [vmem:[%s3562_s5 + $0x38] sm:$0xff]  }
 0x1b8   :  { %v2206_v61 = vadd.f32 %v1238_v31, %v900_v60  ;;  %v1240_v32 = vpop.f32.mrb[19].mxu0  ;;  %1588 = vmatmul.mubr.bf16.gmra.mrb[44].mxu1 %v1311_v25  ;;  %v1289_v34 = vmax.f32 %v2202_v28, 0.0 }
 0x1b9   :  { %v2208_v33 = vadd.f32 %v1240_v32, %v902_v30  ;;  %2118 = vmatpush3.bf16.msra.mxu1 %v2509_v52  ;;  %v1290_v62 = vmax.f32 %v2204_v53, 0.0  ;;  %v930_v52 = vadd.f32 %v3361_v11, %v3374_v17  ;;  %v2510_v11 = vld [vmem:[%s3562_s5 + $0x78] sm:$0xff]   ;;  %v1353_v17 = vld [vmem:[%s3561_s4] sm:$0x3] }
 0x1ba   :  { %v1291_v35 = vmax.f32 %v2206_v61, 0.0  ;;  %2119 = vmatprep.subr.bf16.mxu1 %v2510_v11  ;;  %v3486_v18 = vrot.slane %v1353_v17, %v298_v14 }
 0x1bb   :  { %v1292_v36 = vmax.f32 %v2208_v33, 0.0 }
 0x1bc   :  { %v1313_v38 = vpack.c.bf16 %v1291_v35, %v1289_v34 }
 0x1bd   :  { %v1314_v63 = vpack.c.bf16 %v1292_v36, %v1290_v62  ;;  %v1244_v55 = vpop.f32.mrb[20].mxu0  ;;  %2120 = vmatpush3.bf16.msra.mxu1 %v2511_v12  ;;  %v3490_v62 = vrot.slane %v1353_v17, %v302_v16 }
 0x1be   :  { %v2210_v40 = vadd.f32 %v1244_v55, %v906_v54  ;;  %v1246_v41 = vpop.f32.mrb[21].mxu0 }
 0x1bf   :  { %v2212_v43 = vadd.f32 %v1246_v41, %v908_v37  ;;  %v1248_v44 = vpop.f32.mrb[22].mxu0  ;;  %1597 = vmatprep.mubr.bf16.mxu1 %v1314_v63 }
 0x1c0   :  { %v2214_v0 = vadd.f32 %v1248_v44, %v910_v39  ;;  %v1250_v45 = vpop.f32.mrb[23].mxu0  ;;  %1598 = vmatmul.mubr.bf16.gmra.mrb[48].mxu1 %v1313_v38  ;;  %v1293_v46 = vmax.f32 %v2210_v40, 0.0 }
 0x1c1   :  { %v2216_v56 = vadd.f32 %v1250_v45, %v912_v42  ;;  %v1294_v48 = vmax.f32 %v2212_v43, 0.0 }
 0x1c2   :  { %v1295_v1 = vmax.f32 %v2214_v0, 0.0 }
 0x1c3   :  { %v1296_v57 = vmax.f32 %v2216_v56, 0.0 }
 0x1c4   :  { %v1315_v51 = vpack.c.bf16 %v1295_v1, %v1293_v46 }
 0x1c5   :  { %v1316_v8 = vpack.c.bf16 %v1296_v57, %v1294_v48  ;;  %v1254_v3 = vpop.f32.mrb[24].mxu0 }
 0x1c6   :  { %v2218_v15 = vadd.f32 %v1254_v3, %v916_v47  ;;  %v1256_v19 = vpop.f32.mrb[25].mxu0 }
 0x1c7   :  { %v2220_v20 = vadd.f32 %v1256_v19, %v918_v2  ;;  %v1258_v50 = vpop.f32.mrb[26].mxu0  ;;  %1607 = vmatprep.mubr.bf16.mxu1 %v1316_v8 }
 0x1c8   :  { %v2222_v4 = vadd.f32 %v1258_v50, %v920_v49  ;;  %v1260_v21 = vpop.f32.mrb[27].mxu0  ;;  %1608 = vmatmul.mubr.bf16.gmra.mrb[52].mxu1 %v1315_v51  ;;  %v1297_v22 = vmax.f32 %v2218_v15, 0.0 }
 0x1c9   :  { %v2224_v59 = vadd.f32 %v1260_v21, %v922_v58  ;;  %v1298_v24 = vmax.f32 %v2220_v20, 0.0 }
 0x1ca   :  { %v1299_v5 = vmax.f32 %v2222_v4, 0.0 }
 0x1cb   :  { %v1300_v25 = vmax.f32 %v2224_v59, 0.0 }
 0x1cc   :  { %v1317_v26 = vpack.c.bf16 %v1299_v5, %v1297_v22 }
 0x1cd   :  { %v1318_v27 = vpack.c.bf16 %v1300_v25, %v1298_v24  ;;  %v1264_v7 = vpop.f32.mrb[28].mxu0 }
 0x1ce   :  { %v2226_v60 = vadd.f32 %v1264_v7, %v926_v23  ;;  %v1266_v28 = vpop.f32.mrb[29].mxu0 }
 0x1cf   :  { %v2228_v30 = vadd.f32 %v1266_v28, %v928_v6  ;;  %v1268_v53 = vpop.f32.mrb[30].mxu0  ;;  %1617 = vmatprep.mubr.bf16.mxu1 %v1318_v27 }
 0x1d0   :  { %v2230_v9 = vadd.f32 %v1268_v53, %v930_v52  ;;  %v1270_v31 = vpop.f32.mrb[31].mxu0  ;;  %1618 = vmatmul.mubr.bf16.gmra.mrb[56].mxu1 %v1317_v26  ;;  %v1301_v32 = vmax.f32 %v2226_v60, 0.0 }
 0x1d1   :  { %v2232_v61 = vadd.f32 %v1270_v31, %v932_v29  ;;  %v1302_v33 = vmax.f32 %v2228_v30, 0.0 }
 0x1d2   :  { %v1303_v10 = vmax.f32 %v2230_v9, 0.0 }
 0x1d3   :  { %v1304_v34 = vmax.f32 %v2232_v61, 0.0 }
 0x1d4   :  { %v1319_v35 = vpack.c.bf16 %v1303_v10, %v1301_v32 }
 0x1d5   :  { %v1320_v54 = vpack.c.bf16 %v1304_v34, %v1302_v33 }
 0x1d7   :  { %1627 = vmatprep.mubr.bf16.mxu1 %v1320_v54 }
 0x1d8   :  { %1628 = vmatmul.mubr.bf16.gmra.mrb[60].mxu1 %v1319_v35 }
 0x273   :  { %v1559_v36 = vpop.f32.mrb[32].mxu1 }
 0x274   :  { %v1560_v37 = vadd.f32 %v1559_v36, %v3486_v18  ;;  %v1561_v38 = vpop.f32.mrb[33].mxu1 }
 0x275   :  { %v1562_v63 = vadd.f32 %v1561_v38, %v3490_v62  ;;  %v1563_v55 = vpop.f32.mrb[34].mxu1 }
 0x276   :  { %v1564_v39 = vadd.f32 %v1563_v55, %v3486_v18  ;;  %v1565_v40 = vpop.f32.mrb[35].mxu1  ;;  %v1638_v42 = vmax.f32 %v1560_v37, 0.0 }
 0x277   :  { %v1566_v41 = vadd.f32 %v1565_v40, %v3490_v62  ;;  %v1639_v14 = vmax.f32 %v1562_v63, 0.0 }
 0x278   :  { %v1640_v43 = vmax.f32 %v1564_v39, 0.0 }
 0x279   :  { %v1641_v44 = vmax.f32 %v1566_v41, 0.0 }
 0x27a   :  { %v1670_v0 = vpack.c.bf16 %v1640_v43, %v1638_v42 }
 0x27b   :  { %v1671_v13 = vpack.c.bf16 %v1641_v44, %v1639_v14  ;;  %v1569_v16 = vpop.f32.mrb[36].mxu1 }
 0x27c   :  { %v1570_v45 = vadd.f32 %v1569_v16, %v3486_v18  ;;  %v1571_v56 = vpop.f32.mrb[37].mxu1 }
 0x27d   :  { %v1572_v46 = vadd.f32 %v1571_v56, %v3490_v62  ;;  %v1573_v1 = vpop.f32.mrb[38].mxu1  ;;  %1853 = vmatprep.mubr.bf16.mxu1 %v1671_v13 }
 0x27e   :  { %v1574_v47 = vadd.f32 %v1573_v1, %v3486_v18  ;;  %v1575_v48 = vpop.f32.mrb[39].mxu1  ;;  %1854 = vmatmul.mubr.bf16.vlgmr.msra.gmra.mrb[64].mxu1 %v1670_v0  ;;  %v1642_v2 = vmax.f32 %v1570_v45, 0.0 }
 0x27f   :  { %v1576_v57 = vadd.f32 %v1575_v48, %v3490_v62  ;;  %v1643_v8 = vmax.f32 %v1572_v46, 0.0 }
 0x280   :  { %v1644_v51 = vmax.f32 %v1574_v47, 0.0 }
 0x281   :  { %v1645_v3 = vmax.f32 %v1576_v57, 0.0 }
 0x282   :  { %v1672_v49 = vpack.c.bf16 %v1644_v51, %v1642_v2 }
 0x283   :  { %v1673_v15 = vpack.c.bf16 %v1645_v3, %v1643_v8  ;;  %v1579_v19 = vpop.f32.mrb[40].mxu1 }
 0x284   :  { %v1580_v58 = vadd.f32 %v1579_v19, %v3486_v18  ;;  %v1581_v20 = vpop.f32.mrb[41].mxu1 }
 0x285   :  { %v1582_v50 = vadd.f32 %v1581_v20, %v3490_v62  ;;  %v1583_v4 = vpop.f32.mrb[42].mxu1  ;;  %1861 = vmatprep.mubr.bf16.mxu1 %v1673_v15 }
 0x286   :  { %v1584_v21 = vadd.f32 %v1583_v4, %v3486_v18  ;;  %v1585_v59 = vpop.f32.mrb[43].mxu1  ;;  %1862 = vmatmul.mubr.bf16.gmra.mrb[68].mxu1 %v1672_v49  ;;  %v1646_v5 = vmax.f32 %v1580_v58, 0.0 }
 0x287   :  { %v1586_v22 = vadd.f32 %v1585_v59, %v3490_v62  ;;  %v1647_v24 = vmax.f32 %v1582_v50, 0.0 }
 0x288   :  { %v1648_v23 = vmax.f32 %v1584_v21, 0.0 }
 0x289   :  { %v1649_v25 = vmax.f32 %v1586_v22, 0.0 }
 0x28a   :  { %v1674_v6 = vpack.c.bf16 %v1648_v23, %v1646_v5 }
 0x28b   :  { %v1675_v26 = vpack.c.bf16 %v1649_v25, %v1647_v24  ;;  %v1589_v27 = vpop.f32.mrb[44].mxu1 }
 0x28c   :  { %v1590_v7 = vadd.f32 %v1589_v27, %v3486_v18  ;;  %v1591_v52 = vpop.f32.mrb[45].mxu1 }
 0x28d   :  { %v1592_v60 = vadd.f32 %v1591_v52, %v3490_v62  ;;  %v1593_v28 = vpop.f32.mrb[46].mxu1  ;;  %1869 = vmatprep.mubr.bf16.mxu1 %v1675_v26 }
 0x28e   :  { %v1594_v29 = vadd.f32 %v1593_v28, %v3486_v18  ;;  %v1595_v30 = vpop.f32.mrb[47].mxu1  ;;  %1870 = vmatmul.mubr.bf16.gmra.mrb[72].mxu1 %v1674_v6  ;;  %v1650_v9 = vmax.f32 %v1590_v7, 0.0 }
 0x28f   :  { %v1596_v53 = vadd.f32 %v1595_v30, %v3490_v62  ;;  %v1651_v61 = vmax.f32 %v1592_v60, 0.0 }
 0x290   :  { %v1652_v31 = vmax.f32 %v1594_v29, 0.0 }
 0x291   :  { %v1653_v32 = vmax.f32 %v1596_v53, 0.0 }
 0x292   :  { %v1676_v10 = vpack.c.bf16 %v1652_v31, %v1650_v9  ;;  %v3527_v31 = vld [vmem:[%s3563_s6] ss:$0 sm:$0xff]  ;;  %s2537_s6 = smov [#allocation2]  }
 0x293   :  { %v1677_v33 = vpack.c.bf16 %v1653_v32, %v1651_v61  ;;  %v1599_v34 = vpop.f32.mrb[48].mxu1  ;;  %s1939_s23 = sshll.u32 %s2537_s6, 4  ;;  %s1940_s23 = int_to_ptr.vmem [resolvable:$true] %s1939_s23 }
 0x294   :  { %v1600_v35 = vadd.f32 %v1599_v34, %v3486_v18  ;;  %v1601_v54 = vpop.f32.mrb[49].mxu1  ;;  %s2512_s24 = scalar_lea.vmem %s1940_s23, 2048  ;;  %p2517_p1 = scmp.lt.s32.totalorder %s1940_s23, %s1940_s23 }
 0x295   :  { %v1602_v11 = vadd.f32 %v1601_v54, %v3490_v62  ;;  %v1603_v12 = vpop.f32.mrb[50].mxu1  ;;  %1877 = vmatprep.mubr.bf16.mxu1 %v1677_v33  ;;  %p2513_p0 = scmp.ne.s32.totalorder %s1940_s23, %s2512_s24  ;;  %p2518_p2 = scmp.lt.s32.totalorder %s2512_s24, %s2512_s24 }
 0x296   :  { %v1604_v17 = vadd.f32 %v1603_v12, %v3486_v18  ;;  %v1605_v36 = vpop.f32.mrb[51].mxu1  ;;  %1878 = vmatmul.mubr.bf16.gmra.mrb[76].mxu1 %v1676_v10  ;;  %v1654_v38 = vmax.f32 %v1600_v35, 0.0 }
 0x297   :  { %v1606_v37 = vadd.f32 %v1605_v36, %v3490_v62  ;;  %v1655_v55 = vmax.f32 %v1602_v11, 0.0  ;;  %p2519_p3 = por %p2518_p2, %p2517_p1 }
 0x298   :  { %v1656_v63 = vmax.f32 %v1604_v17, 0.0 }
 0x299   :  { %v1657_v39 = vmax.f32 %v1606_v37, 0.0  ;;  %p2520_p4 = pnand %p2519_p3, %p2513_p0 }
 0x29a   :  { %v1678_v40 = vpack.c.bf16 %v1656_v63, %v1654_v38 }
 0x29b   :  { %v1679_v41 = vpack.c.bf16 %v1657_v39, %v1655_v55  ;;  %v1609_v42 = vpop.f32.mrb[52].mxu1 }
 0x29c   :  { %v1610_v43 = vadd.f32 %v1609_v42, %v3486_v18  ;;  %v1611_v14 = vpop.f32.mrb[53].mxu1 }
 0x29d   :  { %v1612_v44 = vadd.f32 %v1611_v14, %v3490_v62  ;;  %v1613_v0 = vpop.f32.mrb[54].mxu1  ;;  %1885 = vmatprep.mubr.bf16.mxu1 %v1679_v41 }
 0x29e   :  { %v1614_v13 = vadd.f32 %v1613_v0, %v3486_v18  ;;  %v1615_v16 = vpop.f32.mrb[55].mxu1  ;;  %1886 = vmatmul.mubr.bf16.gmra.mrb[80].mxu1 %v1678_v40  ;;  %v1658_v56 = vmax.f32 %v1610_v43, 0.0 }
 0x29f   :  { %v1616_v45 = vadd.f32 %v1615_v16, %v3490_v62  ;;  %v1659_v1 = vmax.f32 %v1612_v44, 0.0 }
 0x2a0   :  { %v1660_v46 = vmax.f32 %v1614_v13, 0.0 }
 0x2a1   :  { %v1661_v47 = vmax.f32 %v1616_v45, 0.0 }
 0x2a2   :  { %v1680_v48 = vpack.c.bf16 %v1660_v46, %v1658_v56 }
 0x2a3   :  { %v1681_v57 = vpack.c.bf16 %v1661_v47, %v1659_v1  ;;  %v1619_v2 = vpop.f32.mrb[56].mxu1 }
 0x2a4   :  { %v1620_v51 = vadd.f32 %v1619_v2, %v3486_v18  ;;  %v1621_v8 = vpop.f32.mrb[57].mxu1 }
 0x2a5   :  { %v1622_v3 = vadd.f32 %v1621_v8, %v3490_v62  ;;  %v1623_v49 = vpop.f32.mrb[58].mxu1  ;;  %1893 = vmatprep.mubr.bf16.mxu1 %v1681_v57 }
 0x2a6   :  { %v1624_v15 = vadd.f32 %v1623_v49, %v3486_v18  ;;  %v1625_v19 = vpop.f32.mrb[59].mxu1  ;;  %1894 = vmatmul.mubr.bf16.gmra.mrb[84].mxu1 %v1680_v48  ;;  %v1662_v20 = vmax.f32 %v1620_v51, 0.0 }
 0x2a7   :  { %v1626_v58 = vadd.f32 %v1625_v19, %v3490_v62  ;;  %v1663_v4 = vmax.f32 %v1622_v3, 0.0 }
 0x2a8   :  { %v1664_v50 = vmax.f32 %v1624_v15, 0.0 }
 0x2a9   :  { %v1665_v21 = vmax.f32 %v1626_v58, 0.0 }
 0x2aa   :  { %v1682_v59 = vpack.c.bf16 %v1664_v50, %v1662_v20 }
 0x2ab   :  { %v1683_v22 = vpack.c.bf16 %v1665_v21, %v1663_v4  ;;  %v1629_v5 = vpop.f32.mrb[60].mxu1 }
 0x2ac   :  { %v1630_v23 = vadd.f32 %v1629_v5, %v3486_v18  ;;  %v1631_v24 = vpop.f32.mrb[61].mxu1 }
 0x2ad   :  { %v1632_v25 = vadd.f32 %v1631_v24, %v3490_v62  ;;  %v1633_v6 = vpop.f32.mrb[62].mxu1  ;;  %1901 = vmatprep.mubr.bf16.mxu1 %v1683_v22 }
 0x2ae   :  { %v1634_v26 = vadd.f32 %v1633_v6, %v3486_v18  ;;  %v1635_v27 = vpop.f32.mrb[63].mxu1  ;;  %1902 = vmatmul.mubr.bf16.gmra.mrb[88].mxu1 %v1682_v59  ;;  %v1666_v52 = vmax.f32 %v1630_v23, 0.0 }
 0x2af   :  { %v1636_v7 = vadd.f32 %v1635_v27, %v3490_v62  ;;  %v1667_v28 = vmax.f32 %v1632_v25, 0.0 }
 0x2b0   :  { %v1668_v60 = vmax.f32 %v1634_v26, 0.0 }
 0x2b1   :  { %v1669_v29 = vmax.f32 %v1636_v7, 0.0 }
 0x2b2   :  { %v1684_v30 = vpack.c.bf16 %v1668_v60, %v1666_v52 }
 0x2b3   :  { %v1685_v53 = vpack.c.bf16 %v1669_v29, %v1667_v28 }
 0x2b5   :  { %1909 = vmatprep.mubr.bf16.mxu1 %v1685_v53 }
 0x2b6   :  { %1910 = vmatmul.mubr.bf16.gmra.mrb[92].mxu1 %v1684_v30 }
 0x351   :  { %v2121_v9 = vpop.f32.mrb[64].mxu1 }
 0x352   :  { %v2122_v61 = vpop.f32.mrb[65].mxu1 }
 0x353   :  { %v2123_v18 = vadd.f32 %v2122_v61, %v2121_v9  ;;  %v2124_v32 = vpop.f32.mrb[66].mxu1 }
 0x354   :  { %v2125_v10 = vpop.f32.mrb[67].mxu1 }
 0x355   :  { %v1856_v62 = vadd.f32 %v2123_v18, %v3527_v31  ;;  %v2126_v33 = vadd.f32 %v2125_v10, %v2124_v32 }
 0x357   :  { %1918 = vst [vmem:[#allocation2] sm:$0xff] %v1856_v62  ;;  %v1859_v34 = vadd.f32 %v2126_v33, %v3527_v31 }
 0x359   :  { %1919 = vst [vmem:[#allocation2 + $0x8] sm:$0xff] %v1859_v34  ;;  %v2127_v35 = vpop.f32.mrb[68].mxu1 }
 0x35a   :  { %v2128_v54 = vpop.f32.mrb[69].mxu1 }
 0x35b   :  { %v2129_v11 = vadd.f32 %v2128_v54, %v2127_v35  ;;  %v2130_v12 = vpop.f32.mrb[70].mxu1 }
 0x35c   :  { %v2131_v17 = vpop.f32.mrb[71].mxu1 }
 0x35d   :  { %v1864_v36 = vadd.f32 %v2129_v11, %v3527_v31  ;;  %v2132_v37 = vadd.f32 %v2131_v17, %v2130_v12 }
 0x35f   :  { %1920 = vst [vmem:[#allocation2 + $0x10] sm:$0xff] %v1864_v36  ;;  %v1867_v38 = vadd.f32 %v2132_v37, %v3527_v31 }
 0x361   :  { %1921 = vst [vmem:[#allocation2 + $0x18] sm:$0xff] %v1867_v38  ;;  %v2133_v63 = vpop.f32.mrb[72].mxu1 }
 0x362   :  { %v2134_v55 = vpop.f32.mrb[73].mxu1 }
 0x363   :  { %v2135_v39 = vadd.f32 %v2134_v55, %v2133_v63  ;;  %v2136_v40 = vpop.f32.mrb[74].mxu1 }
 0x364   :  { %v2137_v41 = vpop.f32.mrb[75].mxu1 }
 0x365   :  { %v1872_v42 = vadd.f32 %v2135_v39, %v3527_v31  ;;  %v2138_v43 = vadd.f32 %v2137_v41, %v2136_v40 }
 0x367   :  { %1922 = vst [vmem:[#allocation2 + $0x20] sm:$0xff] %v1872_v42  ;;  %v1875_v14 = vadd.f32 %v2138_v43, %v3527_v31 }
 0x369   :  { %1923 = vst [vmem:[#allocation2 + $0x28] sm:$0xff] %v1875_v14  ;;  %v2139_v44 = vpop.f32.mrb[76].mxu1 }
 0x36a   :  { %v2140_v0 = vpop.f32.mrb[77].mxu1 }
 0x36b   :  { %v2141_v13 = vadd.f32 %v2140_v0, %v2139_v44  ;;  %v2142_v16 = vpop.f32.mrb[78].mxu1 }
 0x36c   :  { %v2143_v45 = vpop.f32.mrb[79].mxu1 }
 0x36d   :  { %v1880_v56 = vadd.f32 %v2141_v13, %v3527_v31  ;;  %v2144_v46 = vadd.f32 %v2143_v45, %v2142_v16 }
 0x36f   :  { %1924 = vst [vmem:[#allocation2 + $0x30] sm:$0xff] %v1880_v56  ;;  %v1883_v1 = vadd.f32 %v2144_v46, %v3527_v31 }
 0x371   :  { %1925 = vst [vmem:[#allocation2 + $0x38] sm:$0xff] %v1883_v1  ;;  %v2145_v47 = vpop.f32.mrb[80].mxu1 }
 0x372   :  { %v2146_v48 = vpop.f32.mrb[81].mxu1 }
 0x373   :  { %v2147_v57 = vadd.f32 %v2146_v48, %v2145_v47  ;;  %v2148_v2 = vpop.f32.mrb[82].mxu1 }
 0x374   :  { %v2149_v51 = vpop.f32.mrb[83].mxu1 }
 0x375   :  { %v1888_v8 = vadd.f32 %v2147_v57, %v3527_v31  ;;  %v2150_v3 = vadd.f32 %v2149_v51, %v2148_v2 }
 0x377   :  { %1926 = vst [vmem:[#allocation2 + $0x40] sm:$0xff] %v1888_v8  ;;  %v1891_v49 = vadd.f32 %v2150_v3, %v3527_v31 }
 0x379   :  { %1927 = vst [vmem:[#allocation2 + $0x48] sm:$0xff] %v1891_v49  ;;  %v2151_v15 = vpop.f32.mrb[84].mxu1 }
 0x37a   :  { %v2152_v19 = vpop.f32.mrb[85].mxu1 }
 0x37b   :  { %v2153_v58 = vadd.f32 %v2152_v19, %v2151_v15  ;;  %v2154_v20 = vpop.f32.mrb[86].mxu1 }
 0x37c   :  { %v2155_v50 = vpop.f32.mrb[87].mxu1 }
 0x37d   :  { %v1896_v4 = vadd.f32 %v2153_v58, %v3527_v31  ;;  %v2156_v21 = vadd.f32 %v2155_v50, %v2154_v20 }
 0x37f   :  { %1928 = vst [vmem:[#allocation2 + $0x50] sm:$0xff] %v1896_v4  ;;  %v1899_v59 = vadd.f32 %v2156_v21, %v3527_v31 }
 0x381   :  { %1929 = vst [vmem:[#allocation2 + $0x58] sm:$0xff] %v1899_v59  ;;  %v2157_v22 = vpop.f32.mrb[88].mxu1 }
 0x382   :  { %v2158_v5 = vpop.f32.mrb[89].mxu1 }
 0x383   :  { %v2159_v23 = vadd.f32 %v2158_v5, %v2157_v22  ;;  %v2160_v24 = vpop.f32.mrb[90].mxu1 }
 0x384   :  { %v2161_v25 = vpop.f32.mrb[91].mxu1 }
 0x385   :  { %v1904_v6 = vadd.f32 %v2159_v23, %v3527_v31  ;;  %v2162_v26 = vadd.f32 %v2161_v25, %v2160_v24 }
 0x387   :  { %1930 = vst [vmem:[#allocation2 + $0x60] sm:$0xff] %v1904_v6  ;;  %v1907_v27 = vadd.f32 %v2162_v26, %v3527_v31 }
 0x389   :  { %1931 = vst [vmem:[#allocation2 + $0x68] sm:$0xff] %v1907_v27  ;;  %v2163_v7 = vpop.f32.mrb[92].mxu1 }
 0x38a   :  { %v2164_v52 = vpop.f32.mrb[93].mxu1 }
 0x38b   :  { %v2165_v60 = vadd.f32 %v2164_v52, %v2163_v7  ;;  %v2166_v28 = vpop.f32.mrb[94].mxu1 }
 0x38c   :  { %v2167_v29 = vpop.f32.mrb[95].mxu1 }
 0x38d   :  { %v1912_v30 = vadd.f32 %v2165_v60, %v3527_v31  ;;  %v2168_v53 = vadd.f32 %v2167_v29, %v2166_v28 }
 0x38f   :  { %1932 = vst [vmem:[#allocation2 + $0x70] sm:$0xff] %v1912_v30  ;;  %v1915_v9 = vadd.f32 %v2168_v53, %v3527_v31 }
 0x391   :  { %1933 = vst [vmem:[#allocation2 + $0x78] sm:$0xff] %v1915_v9 }
 0x392   :  { %2523 = shalt.err (!%p2520_p4)
}
 0x393   :  { %s2524_s27 = scalar_lea.hbm %s3564_s7, 2048 }
 0x394   :  { %p2525_p5 = scmp.ne.s32.totalorder %s3564_s7, %s2524_s27  ;;  %p2528_p6 = scmp.lt.u32.totalorder %s2524_s27, %s3564_s7 }
 0x396   :  { %p2530_p7 = pnand %p2528_p6, %p2525_p5 }
 0x398   :  { %2533 = shalt.err (!%p2530_p7)
}
 0x399   :  { %s2538_s9 = smov 128   ;;  %s2539_s10 = smov 8  }
 0x39a   :  { %1945 = dma.vmem_to_hbm [thread:$0]  %s1940_s23, 2048, %s3564_s7, [#allocation3], %s2538_s9, %s2538_s9, %s2539_s10  }
 0x39b   :  { %2534 = dma.done.wait [#allocation3], 2048  }
 0x39c   :  { %2535 = vsyncadd [#allocation3], 4294965248 }
 0x39d   :  { %1949 = vsyncpa [#allocation3], 1 }

</bundles_post_ra>
